<compile_context>
chip_gen: v7x
topology: tpu7x:2x2x1
jax: 0.10.0
libtpu: 0.0.40
codegen_flags: <defaults>
</compile_context>

<pallas_src>
import functools

import jax
import jax.numpy as jnp
from jax import lax
from jax.experimental import pallas as pl
from jax.experimental.pallas import tpu as pltpu


def _lr_counts_kernel(yp_ref, yt_ref, sp_out, st_out, stp_out,
                      sp_acc, st_acc, stp_acc, *,
                      logits, n_rows, tile_rows, sub_rows, chunk_rows,
                      steps_per_split, n_full_tiles, total_tiles):
    i = pl.program_id(0)           # split axis (CORE_PARALLEL on multi-TC chips)
    j = pl.program_id(1)           # streaming reduction axis ("arbitrary")

    @pl.when(j == 0)
    def _init():
        sp_acc[...] = jnp.zeros_like(sp_acc)
        st_acc[...] = jnp.zeros_like(st_acc)
        stp_acc[...] = jnp.zeros_like(stp_acc)

    t_idx = i * steps_per_split + j          # global tile index
    tile_row0 = t_idx * tile_rows            # global row offset of this tile
    n_chunks = tile_rows // chunk_rows       # static
    inner = chunk_rows // sub_rows           # static unroll factor

    def accumulate_chunk(base, masked):
        # Fused pass over `chunk_rows` rows: each yp/yt element is loaded once,
        # sigmoid applied once, and partial sums stay in vregs across the
        # unrolled sub-chunks; one read-modify-write of the (sub_rows, C)
        # scratch accumulators per chunk keeps VMEM store traffic low.
        d_sp = d_st = d_stp = None
        for q in range(inner):
            off = base + q * sub_rows
            if not isinstance(off, int):
                off = pl.multiple_of(off, sub_rows)
            yp = yp_ref[pl.ds(off, sub_rows), :].astype(jnp.float32)
            yt = yt_ref[pl.ds(off, sub_rows), :].astype(jnp.float32)
            if logits:
                # sigmoid(x) == 0.5*(tanh(x/2)+1): one EUP push per element,
                # exact, and no exp(-x) overflow edge case.
                yp = 0.5 * (jnp.tanh(0.5 * yp) + 1.0)
            if masked:
                # (sub,1) iota broadcast across C; select (not multiply) so any
                # garbage in overhang rows can never produce NaN in the sums.
                valid = n_rows - (tile_row0 + off)
                rid = lax.broadcasted_iota(jnp.int32, (sub_rows, 1), 0)
                keep = rid < valid
                yp = jnp.where(keep, yp, 0.0)
                yt = jnp.where(keep, yt, 0.0)
            typ = yt * yp
            if d_sp is None:
                d_sp, d_st, d_stp = yp, yt, typ
            else:
                d_sp = d_sp + yp
                d_st = d_st + yt
                d_stp = d_stp + typ
        sp_acc[...] += d_sp
        st_acc[...] += d_st
        stp_acc[...] += d_stp

    def run(masked):
        if n_chunks == 1:
            accumulate_chunk(0, masked)
        else:
            def body(c, carry):
                accumulate_chunk(pl.multiple_of(c * chunk_rows, chunk_rows),
                                 masked)
                return carry
            lax.fori_loop(0, n_chunks, body, 0)

    if n_full_tiles < total_tiles:
        # Some tiles overrun N (partial last tile / clamped dummy split tiles):
        # only those take the masked path.
        @pl.when(t_idx < n_full_tiles)
        def _fast():
            run(False)

        @pl.when(t_idx >= n_full_tiles)
        def _masked():
            run(True)
    else:
        run(False)

    @pl.when(j == steps_per_split - 1)
    def _finalize():
        sp_out[...] = sp_acc[...]
        st_out[...] = st_acc[...]
        stp_out[...] = stp_acc[...]


def _vmem_capacity_bytes():
    try:
        info = pltpu.get_tpu_info()
        v = getattr(info, "vmem_capacity_bytes", None)
        if isinstance(v, int) and v > 0:
            return v
    except Exception:
        pass
    return 64 * 1024 * 1024        # conservative default (v7x per-TC VMEM)


def _num_tensorcores():
    # Conservative detection: only report >1 on clear multi-TC (v7x-class)
    # signals; mis-detection on 1-TC chips would only waste, never break, but
    # we stay strict so CORE_PARALLEL is requested only where it is real.
    try:
        info = pltpu.get_tpu_info()
        for name in ("num_tensorcores", "tensorcores_per_chip"):
            v = getattr(info, name, None)
            if isinstance(v, int) and v > 0:
                return v
    except Exception:
        pass
    try:
        kind = (getattr(jax.devices()[0], "device_kind", "") or "").lower()
        if "v7" in kind or "7x" in kind:
            return 2
    except Exception:
        pass
    return 1


def likelihood_ratio_loss(y_pred, y_true, *, epsilon=1e-07, logits=True,
                          target_step_bytes=8 * 1024 * 1024,
                          batch_tile=None, n_splits=None):
    assert y_pred.ndim == 2 and y_true.ndim == 2
    assert y_pred.shape == y_true.shape
    N, C = y_pred.shape

    itp = jnp.dtype(y_pred.dtype).itemsize
    itt = jnp.dtype(y_true.dtype).itemsize
    bytes_per_row = C * (itp + itt)

    # Sub-chunk rows = native sublane packing of the narrowest dtype so every
    # in-kernel load is whole, aligned packed vregs; chunk = rows per fori step.
    min_item = min(itp, itt)
    sub = {4: 8, 2: 16, 1: 32}.get(min_item, 8)
    chunk = 64                                # multiple of any sub in {8,16,32}

    # ---- generation-aware VMEM budget --------------------------------------
    vmem_cap = _vmem_capacity_bytes()
    if vmem_cap >= 96 * 1024 * 1024:          # 128-MiB class: v5e / v6e
        input_budget = 40 * 1024 * 1024
        vmem_limit = 80 * 1024 * 1024
    else:                                     # 64-MiB class: v7x (per TC)
        input_budget = 20 * 1024 * 1024
        vmem_limit = 40 * 1024 * 1024

    # ---- tile rows: byte target, VMEM-capped, problem-capped ----------------
    rows_target = max(chunk, target_step_bytes // bytes_per_row)
    rows_cap = max(chunk, input_budget // (2 * bytes_per_row))   # double-buffered
    rows_need = -(-N // chunk) * chunk
    tile = min(rows_target, rows_cap, rows_need)
    if batch_tile is not None:                 # explicit override (tests/tuning)
        tile = min(max(batch_tile, chunk), rows_cap)
    tile = max(chunk, (tile // chunk) * chunk)
    n_steps = -(-N // tile)                    # cdiv

    # ---- split the reduction across TensorCores ------------------------------
    cores = _num_tensorcores()
    if n_splits is None:
        n_splits = cores if (cores > 1 and n_steps >= 2 * cores) else 1
    n_splits = max(1, min(n_splits, n_steps))
    steps_per_split = -(-n_steps // n_splits)
    total_tiles = n_splits * steps_per_split
    n_full_tiles = N // tile                   # tiles fully inside the array

    if n_splits > 1 and n_splits == cores and hasattr(pltpu, "CORE_PARALLEL"):
        dim_sem = (pltpu.CORE_PARALLEL, pltpu.ARBITRARY)
    elif n_splits > 1:
        dim_sem = ("parallel", "arbitrary")
    else:
        dim_sem = ("arbitrary", "arbitrary")

    kernel = functools.partial(
        _lr_counts_kernel, logits=logits, n_rows=N, tile_rows=tile,
        sub_rows=sub, chunk_rows=chunk, steps_per_split=steps_per_split,
        n_full_tiles=n_full_tiles, total_tiles=total_tiles)

    def in_map(i, j):
        t = i * steps_per_split + j
        # Dummy split tiles (t >= n_steps) re-read the last in-bounds block;
        # the kernel masks all of their rows so they contribute zero.
        return (jnp.minimum(t, n_steps - 1), 0)

    out_map = lambda i, j: (i, 0)

    step_bytes = tile * bytes_per_row
    in_kwargs = {}
    if n_steps >= 8 and step_bytes < (2 * 1024 * 1024) and hasattr(pl, "Buffered"):
        # Only when per-step transfers stay small: deeper buffering hides DMA
        # issue latency; with >=4 MiB tiles (the normal case) it is unnecessary.
        in_kwargs["pipeline_mode"] = pl.Buffered(3)
    in_spec = pl.BlockSpec((tile, C), in_map, **in_kwargs)

    cost = pl.CostEstimate(
        flops=int(5 * N * C),
        transcendentals=int(N * C) if logits else 0,
        bytes_accessed=int(N * C * (itp + itt) + 3 * n_splits * sub * C * 4))

    s_p, s_t, s_tp = pl.pallas_call(
        kernel,
        out_shape=(jax.ShapeDtypeStruct((n_splits * sub, C), jnp.float32),
                   jax.ShapeDtypeStruct((n_splits * sub, C), jnp.float32),
                   jax.ShapeDtypeStruct((n_splits * sub, C), jnp.float32)),
        grid_spec=pltpu.PrefetchScalarGridSpec(
            num_scalar_prefetch=0,
            grid=(n_splits, steps_per_split),
            in_specs=[in_spec, in_spec],
            out_specs=(pl.BlockSpec((sub, C), out_map),
                       pl.BlockSpec((sub, C), out_map),
                       pl.BlockSpec((sub, C), out_map)),
            scratch_shapes=[pltpu.VMEM((sub, C), jnp.float32)] * 3,
        ),
        compiler_params=pltpu.CompilerParams(
            dimension_semantics=dim_sem,
            vmem_limit_bytes=int(vmem_limit)),
        cost_estimate=cost,
    )(y_pred, y_true)

    # (C,)-sized epilogue: fold per-split / per-sublane partial counts and apply
    # the likelihood-ratio formula (negligible next to the streamed reduction).
    # TODO(synk): for N in the tens of millions, add a pairwise/hierarchical
    # accumulation stage to tighten f32 summation error further.
    s_p = jnp.sum(s_p, axis=0)
    s_t = jnp.sum(s_t, axis=0)
    tp = jnp.sum(s_tp, axis=0)
    fp = s_p - tp
    fn = s_t - tp
    tn = jnp.float32(N) - s_t - fp            # = N - s_t - s_p + tp
    recall = tp / (tp + fn + epsilon)
    spec = tn / (tn + fp + epsilon)
    lrp = recall / (1.0 - spec + epsilon)
    lrn = (1.0 - recall) / (spec + epsilon)
    return -lrp - lrn


def _reference(y_pred, y_true, epsilon=1e-07, logits=True):
    y_pred = y_pred.astype(jnp.float32)
    y_true = y_true.astype(jnp.float32)
    if logits:
        y_pred = jax.nn.sigmoid(y_pred)
    tp = (y_true * y_pred).sum(axis=0)
    tn = ((1 - y_true) * (1 - y_pred)).sum(axis=0)
    fp = ((1 - y_true) * y_pred).sum(axis=0)
    fn = (y_true * (1 - y_pred)).sum(axis=0)
    recall = tp / (tp + fn + epsilon)
    spec = tn / (tn + fp + epsilon)
    lrp = recall / (1 - spec + epsilon)
    lrn = (1 - recall) / (spec + epsilon)
    return -lrp - lrn


if __name__ == "__main__":
    key = jax.random.PRNGKey(0)
    k1, k2, k3, k4 = jax.random.split(key, 4)

    # Test 1: multi-step grid + remainder masking (N=300 not a multiple of 64).
    N, C = 300, 128
    y_pred = jax.random.normal(k1, (N, C), dtype=jnp.float32)            # logits
    y_true = (jax.random.uniform(k2, (N, C)) > 0.5).astype(jnp.float32)  # labels
    ref = _reference(y_pred, y_true)
    out = jax.block_until_ready(likelihood_ratio_loss(y_pred, y_true, batch_tile=64))
    assert out.shape == (C,) and out.dtype == jnp.float32
    assert jnp.allclose(out, ref, rtol=2e-3, atol=2e-3), (out, ref)

    # Test 2: default byte-target tiling (single overhanging tile for small N).
    out2 = jax.block_until_ready(likelihood_ratio_loss(y_pred, y_true))
    assert jnp.allclose(out2, ref, rtol=2e-3, atol=2e-3), (out2, ref)

    # Test 3: narrow HBM dtypes (bf16 preds, int8 labels), aligned N, 4 steps.
    N2, C2 = 512, 128
    yp3 = jax.random.normal(k3, (N2, C2), dtype=jnp.float32).astype(jnp.bfloat16)
    yt3 = (jax.random.uniform(k4, (N2, C2)) > 0.5).astype(jnp.int8)
    out3 = jax.block_until_ready(likelihood_ratio_loss(yp3, yt3, batch_tile=128))
    ref3 = _reference(yp3, yt3)
    assert jnp.allclose(out3, ref3, rtol=1e-2, atol=1e-2), (out3, ref3)

    # Test 4: probabilities path (logits=False), ragged C (< 128 lanes).
    N4, C4 = 100, 40
    yp4 = jax.nn.sigmoid(jax.random.normal(k1, (N4, C4), dtype=jnp.float32))
    yt4 = (jax.random.uniform(k2, (N4, C4)) > 0.5).astype(jnp.float32)
    out4 = jax.block_until_ready(likelihood_ratio_loss(yp4, yt4, logits=False))
    ref4 = _reference(yp4, yt4, logits=False)
    assert jnp.allclose(out4, ref4, rtol=1e-4, atol=1e-4), (out4, ref4)

    print("KERNEL_OK")
</pallas_src>

<mosaic_0001>
module attributes {stable_mosaic.version = 11 : i64} {
  func.func @_lr_counts_kernel(%arg0: i32, %arg1: i32, %arg2: memref<64x128xf32, #tpu.memory_space<vmem>>, %arg3: memref<64x128xf32, #tpu.memory_space<vmem>>, %arg4: memref<8x128xf32, #tpu.memory_space<vmem>>, %arg5: memref<8x128xf32, #tpu.memory_space<vmem>>, %arg6: memref<8x128xf32, #tpu.memory_space<vmem>>, %arg7: memref<8x128xf32, #tpu.memory_space<vmem>>, %arg8: memref<8x128xf32, #tpu.memory_space<vmem>>, %arg9: memref<8x128xf32, #tpu.memory_space<vmem>>) attributes {dimension_semantics = [#tpu.dimension_semantics<arbitrary>, #tpu.dimension_semantics<arbitrary>], iteration_bounds = array<i64: 1, 5>, scalar_prefetch = 0 : i64, scratch_operands = 3 : i64, tpu.core_type = #tpu.core_type<tc>, window_params = [{transform_indices = @transform_0, window_bounds = array<i64: 64, 128>}, {transform_indices = @transform_1, window_bounds = array<i64: 64, 128>}, {transform_indices = @transform_2, window_bounds = array<i64: 8, 128>}, {transform_indices = @transform_3, window_bounds = array<i64: 8, 128>}, {transform_indices = @transform_4, window_bounds = array<i64: 8, 128>}]} {
    %c0_i32 = arith.constant 0 : i32
    %0 = arith.cmpi eq, %arg1, %c0_i32 : i32
    %1 = arith.extui %0 : i1 to i32
    %c0_i32_0 = arith.constant 0 : i32
    %2 = arith.cmpi ne, %1, %c0_i32_0 : i32
    scf.if %2 {
      %cst = arith.constant 0.000000e+00 : f32
      %15 = vector.broadcast %cst : f32 to vector<8x128xf32>
      %c0 = arith.constant 0 : index
      %c0_6 = arith.constant 0 : index
      %16 = vector.load %arg7[%c0, %c0_6] : memref<8x128xf32, #tpu.memory_space<vmem>>, vector<8x128xf32>
      tpu.vector_store %arg7[%c0, %c0_6], %15 {strides = array<i32>} : memref<8x128xf32, #tpu.memory_space<vmem>>, vector<8x128xf32>,
      %cst_7 = arith.constant 0.000000e+00 : f32
      %17 = vector.broadcast %cst_7 : f32 to vector<8x128xf32>
      %c0_8 = arith.constant 0 : index
      %c0_9 = arith.constant 0 : index
      %18 = vector.load %arg8[%c0_8, %c0_9] : memref<8x128xf32, #tpu.memory_space<vmem>>, vector<8x128xf32>
      tpu.vector_store %arg8[%c0_8, %c0_9], %17 {strides = array<i32>} : memref<8x128xf32, #tpu.memory_space<vmem>>, vector<8x128xf32>,
      %cst_10 = arith.constant 0.000000e+00 : f32
      %19 = vector.broadcast %cst_10 : f32 to vector<8x128xf32>
      %c0_11 = arith.constant 0 : index
      %c0_12 = arith.constant 0 : index
      %20 = vector.load %arg9[%c0_11, %c0_12] : memref<8x128xf32, #tpu.memory_space<vmem>>, vector<8x128xf32>
      tpu.vector_store %arg9[%c0_11, %c0_12], %19 {strides = array<i32>} : memref<8x128xf32, #tpu.memory_space<vmem>>, vector<8x128xf32>,
    } else {
    }
    %c5_i32 = arith.constant 5 : i32
    %3 = arith.muli %arg0, %c5_i32 : i32
    %4 = arith.addi %3, %arg1 : i32
    %c64_i32 = arith.constant 64 : i32
    %5 = arith.muli %4, %c64_i32 : i32
    %c4_i32 = arith.constant 4 : i32
    %6 = arith.cmpi slt, %4, %c4_i32 : i32
    %7 = arith.extui %6 : i1 to i32
    %c0_i32_1 = arith.constant 0 : i32
    %8 = arith.cmpi ne, %7, %c0_i32_1 : i32
    scf.if %8 {
      %c0 = arith.constant 0 : index
      %c0_6 = arith.constant 0 : index
      %15 = vector.load %arg2[%c0, %c0_6] : memref<64x128xf32, #tpu.memory_space<vmem>>, vector<8x128xf32>
      %c0_7 = arith.constant 0 : index
      %c0_8 = arith.constant 0 : index
      %16 = vector.load %arg3[%c0_7, %c0_8] : memref<64x128xf32, #tpu.memory_space<vmem>>, vector<8x128xf32>
      %cst = arith.constant 5.000000e-01 : f32
      %17 = vector.broadcast %cst : f32 to vector<8x128xf32>
      %18 = arith.mulf %17, %15 : vector<8x128xf32>
      %19 = math.tanh %18 : vector<8x128xf32>
      %cst_9 = arith.constant 1.000000e+00 : f32
      %20 = vector.broadcast %cst_9 : f32 to vector<8x128xf32>
      %21 = arith.addf %19, %20 : vector<8x128xf32>
      %cst_10 = arith.constant 5.000000e-01 : f32
      %22 = vector.broadcast %cst_10 : f32 to vector<8x128xf32>
      %23 = arith.mulf %22, %21 : vector<8x128xf32>
      %24 = arith.mulf %16, %23 : vector<8x128xf32>
      %c8 = arith.constant 8 : index
      %c0_11 = arith.constant 0 : index
      %25 = vector.load %arg2[%c8, %c0_11] : memref<64x128xf32, #tpu.memory_space<vmem>>, vector<8x128xf32>
      %c8_12 = arith.constant 8 : index
      %c0_13 = arith.constant 0 : index
      %26 = vector.load %arg3[%c8_12, %c0_13] : memref<64x128xf32, #tpu.memory_space<vmem>>, vector<8x128xf32>
      %cst_14 = arith.constant 5.000000e-01 : f32
      %27 = vector.broadcast %cst_14 : f32 to vector<8x128xf32>
      %28 = arith.mulf %27, %25 : vector<8x128xf32>
      %29 = math.tanh %28 : vector<8x128xf32>
      %cst_15 = arith.constant 1.000000e+00 : f32
      %30 = vector.broadcast %cst_15 : f32 to vector<8x128xf32>
      %31 = arith.addf %29, %30 : vector<8x128xf32>
      %cst_16 = arith.constant 5.000000e-01 : f32
      %32 = vector.broadcast %cst_16 : f32 to vector<8x128xf32>
      %33 = arith.mulf %32, %31 : vector<8x128xf32>
      %34 = arith.mulf %26, %33 : vector<8x128xf32>
      %35 = arith.addf %23, %33 : vector<8x128xf32>
      %36 = arith.addf %16, %26 : vector<8x128xf32>
      %37 = arith.addf %24, %34 : vector<8x128xf32>
      %c16 = arith.constant 16 : index
      %c0_17 = arith.constant 0 : index
      %38 = vector.load %arg2[%c16, %c0_17] : memref<64x128xf32, #tpu.memory_space<vmem>>, vector<8x128xf32>
      %c16_18 = arith.constant 16 : index
      %c0_19 = arith.constant 0 : index
      %39 = vector.load %arg3[%c16_18, %c0_19] : memref<64x128xf32, #tpu.memory_space<vmem>>, vector<8x128xf32>
      %cst_20 = arith.constant 5.000000e-01 : f32
      %40 = vector.broadcast %cst_20 : f32 to vector<8x128xf32>
      %41 = arith.mulf %40, %38 : vector<8x128xf32>
      %42 = math.tanh %41 : vector<8x128xf32>
      %cst_21 = arith.constant 1.000000e+00 : f32
      %43 = vector.broadcast %cst_21 : f32 to vector<8x128xf32>
      %44 = arith.addf %42, %43 : vector<8x128xf32>
      %cst_22 = arith.constant 5.000000e-01 : f32
      %45 = vector.broadcast %cst_22 : f32 to vector<8x128xf32>
      %46 = arith.mulf %45, %44 : vector<8x128xf32>
      %47 = arith.mulf %39, %46 : vector<8x128xf32>
      %48 = arith.addf %35, %46 : vector<8x128xf32>
      %49 = arith.addf %36, %39 : vector<8x128xf32>
      %50 = arith.addf %37, %47 : vector<8x128xf32>
      %c24 = arith.constant 24 : index
      %c0_23 = arith.constant 0 : index
      %51 = vector.load %arg2[%c24, %c0_23] : memref<64x128xf32, #tpu.memory_space<vmem>>, vector<8x128xf32>
      %c24_24 = arith.constant 24 : index
      %c0_25 = arith.constant 0 : index
      %52 = vector.load %arg3[%c24_24, %c0_25] : memref<64x128xf32, #tpu.memory_space<vmem>>, vector<8x128xf32>
      %cst_26 = arith.constant 5.000000e-01 : f32
      %53 = vector.broadcast %cst_26 : f32 to vector<8x128xf32>
      %54 = arith.mulf %53, %51 : vector<8x128xf32>
      %55 = math.tanh %54 : vector<8x128xf32>
      %cst_27 = arith.constant 1.000000e+00 : f32
      %56 = vector.broadcast %cst_27 : f32 to vector<8x128xf32>
      %57 = arith.addf %55, %56 : vector<8x128xf32>
      %cst_28 = arith.constant 5.000000e-01 : f32
      %58 = vector.broadcast %cst_28 : f32 to vector<8x128xf32>
      %59 = arith.mulf %58, %57 : vector<8x128xf32>
      %60 = arith.mulf %52, %59 : vector<8x128xf32>
      %61 = arith.addf %48, %59 : vector<8x128xf32>
      %62 = arith.addf %49, %52 : vector<8x128xf32>
      %63 = arith.addf %50, %60 : vector<8x128xf32>
      %c32 = arith.constant 32 : index
      %c0_29 = arith.constant 0 : index
      %64 = vector.load %arg2[%c32, %c0_29] : memref<64x128xf32, #tpu.memory_space<vmem>>, vector<8x128xf32>
      %c32_30 = arith.constant 32 : index
      %c0_31 = arith.constant 0 : index
      %65 = vector.load %arg3[%c32_30, %c0_31] : memref<64x128xf32, #tpu.memory_space<vmem>>, vector<8x128xf32>
      %cst_32 = arith.constant 5.000000e-01 : f32
      %66 = vector.broadcast %cst_32 : f32 to vector<8x128xf32>
      %67 = arith.mulf %66, %64 : vector<8x128xf32>
      %68 = math.tanh %67 : vector<8x128xf32>
      %cst_33 = arith.constant 1.000000e+00 : f32
      %69 = vector.broadcast %cst_33 : f32 to vector<8x128xf32>
      %70 = arith.addf %68, %69 : vector<8x128xf32>
      %cst_34 = arith.constant 5.000000e-01 : f32
      %71 = vector.broadcast %cst_34 : f32 to vector<8x128xf32>
      %72 = arith.mulf %71, %70 : vector<8x128xf32>
      %73 = arith.mulf %65, %72 : vector<8x128xf32>
      %74 = arith.addf %61, %72 : vector<8x128xf32>
      %75 = arith.addf %62, %65 : vector<8x128xf32>
      %76 = arith.addf %63, %73 : vector<8x128xf32>
      %c40 = arith.constant 40 : index
      %c0_35 = arith.constant 0 : index
      %77 = vector.load %arg2[%c40, %c0_35] : memref<64x128xf32, #tpu.memory_space<vmem>>, vector<8x128xf32>
      %c40_36 = arith.constant 40 : index
      %c0_37 = arith.constant 0 : index
      %78 = vector.load %arg3[%c40_36, %c0_37] : memref<64x128xf32, #tpu.memory_space<vmem>>, vector<8x128xf32>
      %cst_38 = arith.constant 5.000000e-01 : f32
      %79 = vector.broadcast %cst_38 : f32 to vector<8x128xf32>
      %80 = arith.mulf %79, %77 : vector<8x128xf32>
      %81 = math.tanh %80 : vector<8x128xf32>
      %cst_39 = arith.constant 1.000000e+00 : f32
      %82 = vector.broadcast %cst_39 : f32 to vector<8x128xf32>
      %83 = arith.addf %81, %82 : vector<8x128xf32>
      %cst_40 = arith.constant 5.000000e-01 : f32
      %84 = vector.broadcast %cst_40 : f32 to vector<8x128xf32>
      %85 = arith.mulf %84, %83 : vector<8x128xf32>
      %86 = arith.mulf %78, %85 : vector<8x128xf32>
      %87 = arith.addf %74, %85 : vector<8x128xf32>
      %88 = arith.addf %75, %78 : vector<8x128xf32>
      %89 = arith.addf %76, %86 : vector<8x128xf32>
      %c48 = arith.constant 48 : index
      %c0_41 = arith.constant 0 : index
      %90 = vector.load %arg2[%c48, %c0_41] : memref<64x128xf32, #tpu.memory_space<vmem>>, vector<8x128xf32>
      %c48_42 = arith.constant 48 : index
      %c0_43 = arith.constant 0 : index
      %91 = vector.load %arg3[%c48_42, %c0_43] : memref<64x128xf32, #tpu.memory_space<vmem>>, vector<8x128xf32>
      %cst_44 = arith.constant 5.000000e-01 : f32
      %92 = vector.broadcast %cst_44 : f32 to vector<8x128xf32>
      %93 = arith.mulf %92, %90 : vector<8x128xf32>
      %94 = math.tanh %93 : vector<8x128xf32>
      %cst_45 = arith.constant 1.000000e+00 : f32
      %95 = vector.broadcast %cst_45 : f32 to vector<8x128xf32>
      %96 = arith.addf %94, %95 : vector<8x128xf32>
      %cst_46 = arith.constant 5.000000e-01 : f32
      %97 = vector.broadcast %cst_46 : f32 to vector<8x128xf32>
      %98 = arith.mulf %97, %96 : vector<8x128xf32>
      %99 = arith.mulf %91, %98 : vector<8x128xf32>
      %100 = arith.addf %87, %98 : vector<8x128xf32>
      %101 = arith.addf %88, %91 : vector<8x128xf32>
      %102 = arith.addf %89, %99 : vector<8x128xf32>
      %c56 = arith.constant 56 : index
      %c0_47 = arith.constant 0 : index
      %103 = vector.load %arg2[%c56, %c0_47] : memref<64x128xf32, #tpu.memory_space<vmem>>, vector<8x128xf32>
      %c56_48 = arith.constant 56 : index
      %c0_49 = arith.constant 0 : index
      %104 = vector.load %arg3[%c56_48, %c0_49] : memref<64x128xf32, #tpu.memory_space<vmem>>, vector<8x128xf32>
      %cst_50 = arith.constant 5.000000e-01 : f32
      %105 = vector.broadcast %cst_50 : f32 to vector<8x128xf32>
      %106 = arith.mulf %105, %103 : vector<8x128xf32>
      %107 = math.tanh %106 : vector<8x128xf32>
      %cst_51 = arith.constant 1.000000e+00 : f32
      %108 = vector.broadcast %cst_51 : f32 to vector<8x128xf32>
      %109 = arith.addf %107, %108 : vector<8x128xf32>
      %cst_52 = arith.constant 5.000000e-01 : f32
      %110 = vector.broadcast %cst_52 : f32 to vector<8x128xf32>
      %111 = arith.mulf %110, %109 : vector<8x128xf32>
      %112 = arith.mulf %104, %111 : vector<8x128xf32>
      %113 = arith.addf %100, %111 : vector<8x128xf32>
      %114 = arith.addf %101, %104 : vector<8x128xf32>
      %115 = arith.addf %102, %112 : vector<8x128xf32>
      %c0_53 = arith.constant 0 : index
      %c0_54 = arith.constant 0 : index
      %116 = vector.load %arg7[%c0_53, %c0_54] : memref<8x128xf32, #tpu.memory_space<vmem>>, vector<8x128xf32>
      %117 = arith.addf %116, %113 : vector<8x128xf32>
      %c0_55 = arith.constant 0 : index
      %c0_56 = arith.constant 0 : index
      %118 = vector.load %arg7[%c0_55, %c0_56] : memref<8x128xf32, #tpu.memory_space<vmem>>, vector<8x128xf32>
      tpu.vector_store %arg7[%c0_55, %c0_56], %117 {strides = array<i32>} : memref<8x128xf32, #tpu.memory_space<vmem>>, vector<8x128xf32>,
      %c0_57 = arith.constant 0 : index
      %c0_58 = arith.constant 0 : index
      %119 = vector.load %arg8[%c0_57, %c0_58] : memref<8x128xf32, #tpu.memory_space<vmem>>, vector<8x128xf32>
      %120 = arith.addf %119, %114 : vector<8x128xf32>
      %c0_59 = arith.constant 0 : index
      %c0_60 = arith.constant 0 : index
      %121 = vector.load %arg8[%c0_59, %c0_60] : memref<8x128xf32, #tpu.memory_space<vmem>>, vector<8x128xf32>
      tpu.vector_store %arg8[%c0_59, %c0_60], %120 {strides = array<i32>} : memref<8x128xf32, #tpu.memory_space<vmem>>, vector<8x128xf32>,
      %c0_61 = arith.constant 0 : index
      %c0_62 = arith.constant 0 : index
      %122 = vector.load %arg9[%c0_61, %c0_62] : memref<8x128xf32, #tpu.memory_space<vmem>>, vector<8x128xf32>
      %123 = arith.addf %122, %115 : vector<8x128xf32>
      %c0_63 = arith.constant 0 : index
      %c0_64 = arith.constant 0 : index
      %124 = vector.load %arg9[%c0_63, %c0_64] : memref<8x128xf32, #tpu.memory_space<vmem>>, vector<8x128xf32>
      tpu.vector_store %arg9[%c0_63, %c0_64], %123 {strides = array<i32>} : memref<8x128xf32, #tpu.memory_space<vmem>>, vector<8x128xf32>,
    } else {
    }
    %c4_i32_2 = arith.constant 4 : i32
    %9 = arith.cmpi sge, %4, %c4_i32_2 : i32
    %10 = arith.extui %9 : i1 to i32
    %c0_i32_3 = arith.constant 0 : i32
    %11 = arith.cmpi ne, %10, %c0_i32_3 : i32
    scf.if %11 {
      %c0 = arith.constant 0 : index
      %c0_6 = arith.constant 0 : index
      %15 = vector.load %arg2[%c0, %c0_6] : memref<64x128xf32, #tpu.memory_space<vmem>>, vector<8x128xf32>
      %c0_7 = arith.constant 0 : index
      %c0_8 = arith.constant 0 : index
      %16 = vector.load %arg3[%c0_7, %c0_8] : memref<64x128xf32, #tpu.memory_space<vmem>>, vector<8x128xf32>
      %cst = arith.constant 5.000000e-01 : f32
      %17 = vector.broadcast %cst : f32 to vector<8x128xf32>
      %18 = arith.mulf %17, %15 : vector<8x128xf32>
      %19 = math.tanh %18 : vector<8x128xf32>
      %cst_9 = arith.constant 1.000000e+00 : f32
      %20 = vector.broadcast %cst_9 : f32 to vector<8x128xf32>
      %21 = arith.addf %19, %20 : vector<8x128xf32>
      %cst_10 = arith.constant 5.000000e-01 : f32
      %22 = vector.broadcast %cst_10 : f32 to vector<8x128xf32>
      %23 = arith.mulf %22, %21 : vector<8x128xf32>
      %c0_i32_11 = arith.constant 0 : i32
      %24 = arith.addi %5, %c0_i32_11 : i32
      %c300_i32 = arith.constant 300 : i32
      %25 = arith.subi %c300_i32, %24 : i32
      %26 = tpu.iota {dimensions = array<i32: 0>} : vector<8x1xi32>
      %27 = vector.broadcast %25 : i32 to vector<8x1xi32>
      %28 = arith.cmpi slt, %26, %27 : vector<8x1xi32>
      %cst_12 = arith.constant 0.000000e+00 : f32
      %29 = vector.shape_cast %28 : vector<8x1xi1> to vector<8x1xi1>
      %30 = vector.broadcast %29 : vector<8x1xi1> to vector<8x128xi1>
      %31 = vector.broadcast %cst_12 : f32 to vector<8x128xf32>
      %32 = arith.select %30, %23, %31 : vector<8x128xi1>, vector<8x128xf32>
      %cst_13 = arith.constant 0.000000e+00 : f32
      %33 = vector.shape_cast %28 : vector<8x1xi1> to vector<8x1xi1>
      %34 = vector.broadcast %33 : vector<8x1xi1> to vector<8x128xi1>
      %35 = vector.broadcast %cst_13 : f32 to vector<8x128xf32>
      %36 = arith.select %34, %16, %35 : vector<8x128xi1>, vector<8x128xf32>
      %37 = arith.mulf %36, %32 : vector<8x128xf32>
      %c8 = arith.constant 8 : index
      %c0_14 = arith.constant 0 : index
      %38 = vector.load %arg2[%c8, %c0_14] : memref<64x128xf32, #tpu.memory_space<vmem>>, vector<8x128xf32>
      %c8_15 = arith.constant 8 : index
      %c0_16 = arith.constant 0 : index
      %39 = vector.load %arg3[%c8_15, %c0_16] : memref<64x128xf32, #tpu.memory_space<vmem>>, vector<8x128xf32>
      %cst_17 = arith.constant 5.000000e-01 : f32
      %40 = vector.broadcast %cst_17 : f32 to vector<8x128xf32>
      %41 = arith.mulf %40, %38 : vector<8x128xf32>
      %42 = math.tanh %41 : vector<8x128xf32>
      %cst_18 = arith.constant 1.000000e+00 : f32
      %43 = vector.broadcast %cst_18 : f32 to vector<8x128xf32>
      %44 = arith.addf %42, %43 : vector<8x128xf32>
      %cst_19 = arith.constant 5.000000e-01 : f32
      %45 = vector.broadcast %cst_19 : f32 to vector<8x128xf32>
      %46 = arith.mulf %45, %44 : vector<8x128xf32>
      %c8_i32 = arith.constant 8 : i32
      %47 = arith.addi %5, %c8_i32 : i32
      %c300_i32_20 = arith.constant 300 : i32
      %48 = arith.subi %c300_i32_20, %47 : i32
      %49 = tpu.iota {dimensions = array<i32: 0>} : vector<8x1xi32>
      %50 = vector.broadcast %48 : i32 to vector<8x1xi32>
      %51 = arith.cmpi slt, %49, %50 : vector<8x1xi32>
      %cst_21 = arith.constant 0.000000e+00 : f32
      %52 = vector.shape_cast %51 : vector<8x1xi1> to vector<8x1xi1>
      %53 = vector.broadcast %52 : vector<8x1xi1> to vector<8x128xi1>
      %54 = vector.broadcast %cst_21 : f32 to vector<8x128xf32>
      %55 = arith.select %53, %46, %54 : vector<8x128xi1>, vector<8x128xf32>
      %cst_22 = arith.constant 0.000000e+00 : f32
      %56 = vector.shape_cast %51 : vector<8x1xi1> to vector<8x1xi1>
      %57 = vector.broadcast %56 : vector<8x1xi1> to vector<8x128xi1>
      %58 = vector.broadcast %cst_22 : f32 to vector<8x128xf32>
      %59 = arith.select %57, %39, %58 : vector<8x128xi1>, vector<8x128xf32>
      %60 = arith.mulf %59, %55 : vector<8x128xf32>
      %61 = arith.addf %32, %55 : vector<8x128xf32>
      %62 = arith.addf %36, %59 : vector<8x128xf32>
      %63 = arith.addf %37, %60 : vector<8x128xf32>
      %c16 = arith.constant 16 : index
      %c0_23 = arith.constant 0 : index
      %64 = vector.load %arg2[%c16, %c0_23] : memref<64x128xf32, #tpu.memory_space<vmem>>, vector<8x128xf32>
      %c16_24 = arith.constant 16 : index
      %c0_25 = arith.constant 0 : index
      %65 = vector.load %arg3[%c16_24, %c0_25] : memref<64x128xf32, #tpu.memory_space<vmem>>, vector<8x128xf32>
      %cst_26 = arith.constant 5.000000e-01 : f32
      %66 = vector.broadcast %cst_26 : f32 to vector<8x128xf32>
      %67 = arith.mulf %66, %64 : vector<8x128xf32>
      %68 = math.tanh %67 : vector<8x128xf32>
      %cst_27 = arith.constant 1.000000e+00 : f32
      %69 = vector.broadcast %cst_27 : f32 to vector<8x128xf32>
      %70 = arith.addf %68, %69 : vector<8x128xf32>
      %cst_28 = arith.constant 5.000000e-01 : f32
      %71 = vector.broadcast %cst_28 : f32 to vector<8x128xf32>
      %72 = arith.mulf %71, %70 : vector<8x128xf32>
      %c16_i32 = arith.constant 16 : i32
      %73 = arith.addi %5, %c16_i32 : i32
      %c300_i32_29 = arith.constant 300 : i32
      %74 = arith.subi %c300_i32_29, %73 : i32
      %75 = tpu.iota {dimensions = array<i32: 0>} : vector<8x1xi32>
      %76 = vector.broadcast %74 : i32 to vector<8x1xi32>
      %77 = arith.cmpi slt, %75, %76 : vector<8x1xi32>
      %cst_30 = arith.constant 0.000000e+00 : f32
      %78 = vector.shape_cast %77 : vector<8x1xi1> to vector<8x1xi1>
      %79 = vector.broadcast %78 : vector<8x1xi1> to vector<8x128xi1>
      %80 = vector.broadcast %cst_30 : f32 to vector<8x128xf32>
      %81 = arith.select %79, %72, %80 : vector<8x128xi1>, vector<8x128xf32>
      %cst_31 = arith.constant 0.000000e+00 : f32
      %82 = vector.shape_cast %77 : vector<8x1xi1> to vector<8x1xi1>
      %83 = vector.broadcast %82 : vector<8x1xi1> to vector<8x128xi1>
      %84 = vector.broadcast %cst_31 : f32 to vector<8x128xf32>
      %85 = arith.select %83, %65, %84 : vector<8x128xi1>, vector<8x128xf32>
      %86 = arith.mulf %85, %81 : vector<8x128xf32>
      %87 = arith.addf %61, %81 : vector<8x128xf32>
      %88 = arith.addf %62, %85 : vector<8x128xf32>
      %89 = arith.addf %63, %86 : vector<8x128xf32>
      %c24 = arith.constant 24 : index
      %c0_32 = arith.constant 0 : index
      %90 = vector.load %arg2[%c24, %c0_32] : memref<64x128xf32, #tpu.memory_space<vmem>>, vector<8x128xf32>
      %c24_33 = arith.constant 24 : index
      %c0_34 = arith.constant 0 : index
      %91 = vector.load %arg3[%c24_33, %c0_34] : memref<64x128xf32, #tpu.memory_space<vmem>>, vector<8x128xf32>
      %cst_35 = arith.constant 5.000000e-01 : f32
      %92 = vector.broadcast %cst_35 : f32 to vector<8x128xf32>
      %93 = arith.mulf %92, %90 : vector<8x128xf32>
      %94 = math.tanh %93 : vector<8x128xf32>
      %cst_36 = arith.constant 1.000000e+00 : f32
      %95 = vector.broadcast %cst_36 : f32 to vector<8x128xf32>
      %96 = arith.addf %94, %95 : vector<8x128xf32>
      %cst_37 = arith.constant 5.000000e-01 : f32
      %97 = vector.broadcast %cst_37 : f32 to vector<8x128xf32>
      %98 = arith.mulf %97, %96 : vector<8x128xf32>
      %c24_i32 = arith.constant 24 : i32
      %99 = arith.addi %5, %c24_i32 : i32
      %c300_i32_38 = arith.constant 300 : i32
      %100 = arith.subi %c300_i32_38, %99 : i32
      %101 = tpu.iota {dimensions = array<i32: 0>} : vector<8x1xi32>
      %102 = vector.broadcast %100 : i32 to vector<8x1xi32>
      %103 = arith.cmpi slt, %101, %102 : vector<8x1xi32>
      %cst_39 = arith.constant 0.000000e+00 : f32
      %104 = vector.shape_cast %103 : vector<8x1xi1> to vector<8x1xi1>
      %105 = vector.broadcast %104 : vector<8x1xi1> to vector<8x128xi1>
      %106 = vector.broadcast %cst_39 : f32 to vector<8x128xf32>
      %107 = arith.select %105, %98, %106 : vector<8x128xi1>, vector<8x128xf32>
      %cst_40 = arith.constant 0.000000e+00 : f32
      %108 = vector.shape_cast %103 : vector<8x1xi1> to vector<8x1xi1>
      %109 = vector.broadcast %108 : vector<8x1xi1> to vector<8x128xi1>
      %110 = vector.broadcast %cst_40 : f32 to vector<8x128xf32>
      %111 = arith.select %109, %91, %110 : vector<8x128xi1>, vector<8x128xf32>
      %112 = arith.mulf %111, %107 : vector<8x128xf32>
      %113 = arith.addf %87, %107 : vector<8x128xf32>
      %114 = arith.addf %88, %111 : vector<8x128xf32>
      %115 = arith.addf %89, %112 : vector<8x128xf32>
      %c32 = arith.constant 32 : index
      %c0_41 = arith.constant 0 : index
      %116 = vector.load %arg2[%c32, %c0_41] : memref<64x128xf32, #tpu.memory_space<vmem>>, vector<8x128xf32>
      %c32_42 = arith.constant 32 : index
      %c0_43 = arith.constant 0 : index
      %117 = vector.load %arg3[%c32_42, %c0_43] : memref<64x128xf32, #tpu.memory_space<vmem>>, vector<8x128xf32>
      %cst_44 = arith.constant 5.000000e-01 : f32
      %118 = vector.broadcast %cst_44 : f32 to vector<8x128xf32>
      %119 = arith.mulf %118, %116 : vector<8x128xf32>
      %120 = math.tanh %119 : vector<8x128xf32>
      %cst_45 = arith.constant 1.000000e+00 : f32
      %121 = vector.broadcast %cst_45 : f32 to vector<8x128xf32>
      %122 = arith.addf %120, %121 : vector<8x128xf32>
      %cst_46 = arith.constant 5.000000e-01 : f32
      %123 = vector.broadcast %cst_46 : f32 to vector<8x128xf32>
      %124 = arith.mulf %123, %122 : vector<8x128xf32>
      %c32_i32 = arith.constant 32 : i32
      %125 = arith.addi %5, %c32_i32 : i32
      %c300_i32_47 = arith.constant 300 : i32
      %126 = arith.subi %c300_i32_47, %125 : i32
      %127 = tpu.iota {dimensions = array<i32: 0>} : vector<8x1xi32>
      %128 = vector.broadcast %126 : i32 to vector<8x1xi32>
      %129 = arith.cmpi slt, %127, %128 : vector<8x1xi32>
      %cst_48 = arith.constant 0.000000e+00 : f32
      %130 = vector.shape_cast %129 : vector<8x1xi1> to vector<8x1xi1>
      %131 = vector.broadcast %130 : vector<8x1xi1> to vector<8x128xi1>
      %132 = vector.broadcast %cst_48 : f32 to vector<8x128xf32>
      %133 = arith.select %131, %124, %132 : vector<8x128xi1>, vector<8x128xf32>
      %cst_49 = arith.constant 0.000000e+00 : f32
      %134 = vector.shape_cast %129 : vector<8x1xi1> to vector<8x1xi1>
      %135 = vector.broadcast %134 : vector<8x1xi1> to vector<8x128xi1>
      %136 = vector.broadcast %cst_49 : f32 to vector<8x128xf32>
      %137 = arith.select %135, %117, %136 : vector<8x128xi1>, vector<8x128xf32>
      %138 = arith.mulf %137, %133 : vector<8x128xf32>
      %139 = arith.addf %113, %133 : vector<8x128xf32>
      %140 = arith.addf %114, %137 : vector<8x128xf32>
      %141 = arith.addf %115, %138 : vector<8x128xf32>
      %c40 = arith.constant 40 : index
      %c0_50 = arith.constant 0 : index
      %142 = vector.load %arg2[%c40, %c0_50] : memref<64x128xf32, #tpu.memory_space<vmem>>, vector<8x128xf32>
      %c40_51 = arith.constant 40 : index
      %c0_52 = arith.constant 0 : index
      %143 = vector.load %arg3[%c40_51, %c0_52] : memref<64x128xf32, #tpu.memory_space<vmem>>, vector<8x128xf32>
      %cst_53 = arith.constant 5.000000e-01 : f32
      %144 = vector.broadcast %cst_53 : f32 to vector<8x128xf32>
      %145 = arith.mulf %144, %142 : vector<8x128xf32>
      %146 = math.tanh %145 : vector<8x128xf32>
      %cst_54 = arith.constant 1.000000e+00 : f32
      %147 = vector.broadcast %cst_54 : f32 to vector<8x128xf32>
      %148 = arith.addf %146, %147 : vector<8x128xf32>
      %cst_55 = arith.constant 5.000000e-01 : f32
      %149 = vector.broadcast %cst_55 : f32 to vector<8x128xf32>
      %150 = arith.mulf %149, %148 : vector<8x128xf32>
      %c40_i32 = arith.constant 40 : i32
      %151 = arith.addi %5, %c40_i32 : i32
      %c300_i32_56 = arith.constant 300 : i32
      %152 = arith.subi %c300_i32_56, %151 : i32
      %153 = tpu.iota {dimensions = array<i32: 0>} : vector<8x1xi32>
      %154 = vector.broadcast %152 : i32 to vector<8x1xi32>
      %155 = arith.cmpi slt, %153, %154 : vector<8x1xi32>
      %cst_57 = arith.constant 0.000000e+00 : f32
      %156 = vector.shape_cast %155 : vector<8x1xi1> to vector<8x1xi1>
      %157 = vector.broadcast %156 : vector<8x1xi1> to vector<8x128xi1>
      %158 = vector.broadcast %cst_57 : f32 to vector<8x128xf32>
      %159 = arith.select %157, %150, %158 : vector<8x128xi1>, vector<8x128xf32>
      %cst_58 = arith.constant 0.000000e+00 : f32
      %160 = vector.shape_cast %155 : vector<8x1xi1> to vector<8x1xi1>
      %161 = vector.broadcast %160 : vector<8x1xi1> to vector<8x128xi1>
      %162 = vector.broadcast %cst_58 : f32 to vector<8x128xf32>
      %163 = arith.select %161, %143, %162 : vector<8x128xi1>, vector<8x128xf32>
      %164 = arith.mulf %163, %159 : vector<8x128xf32>
      %165 = arith.addf %139, %159 : vector<8x128xf32>
      %166 = arith.addf %140, %163 : vector<8x128xf32>
      %167 = arith.addf %141, %164 : vector<8x128xf32>
      %c48 = arith.constant 48 : index
      %c0_59 = arith.constant 0 : index
      %168 = vector.load %arg2[%c48, %c0_59] : memref<64x128xf32, #tpu.memory_space<vmem>>, vector<8x128xf32>
      %c48_60 = arith.constant 48 : index
      %c0_61 = arith.constant 0 : index
      %169 = vector.load %arg3[%c48_60, %c0_61] : memref<64x128xf32, #tpu.memory_space<vmem>>, vector<8x128xf32>
      %cst_62 = arith.constant 5.000000e-01 : f32
      %170 = vector.broadcast %cst_62 : f32 to vector<8x128xf32>
      %171 = arith.mulf %170, %168 : vector<8x128xf32>
      %172 = math.tanh %171 : vector<8x128xf32>
      %cst_63 = arith.constant 1.000000e+00 : f32
      %173 = vector.broadcast %cst_63 : f32 to vector<8x128xf32>
      %174 = arith.addf %172, %173 : vector<8x128xf32>
      %cst_64 = arith.constant 5.000000e-01 : f32
      %175 = vector.broadcast %cst_64 : f32 to vector<8x128xf32>
      %176 = arith.mulf %175, %174 : vector<8x128xf32>
      %c48_i32 = arith.constant 48 : i32
      %177 = arith.addi %5, %c48_i32 : i32
      %c300_i32_65 = arith.constant 300 : i32
      %178 = arith.subi %c300_i32_65, %177 : i32
      %179 = tpu.iota {dimensions = array<i32: 0>} : vector<8x1xi32>
      %180 = vector.broadcast %178 : i32 to vector<8x1xi32>
      %181 = arith.cmpi slt, %179, %180 : vector<8x1xi32>
      %cst_66 = arith.constant 0.000000e+00 : f32
      %182 = vector.shape_cast %181 : vector<8x1xi1> to vector<8x1xi1>
      %183 = vector.broadcast %182 : vector<8x1xi1> to vector<8x128xi1>
      %184 = vector.broadcast %cst_66 : f32 to vector<8x128xf32>
      %185 = arith.select %183, %176, %184 : vector<8x128xi1>, vector<8x128xf32>
      %cst_67 = arith.constant 0.000000e+00 : f32
      %186 = vector.shape_cast %181 : vector<8x1xi1> to vector<8x1xi1>
      %187 = vector.broadcast %186 : vector<8x1xi1> to vector<8x128xi1>
      %188 = vector.broadcast %cst_67 : f32 to vector<8x128xf32>
      %189 = arith.select %187, %169, %188 : vector<8x128xi1>, vector<8x128xf32>
      %190 = arith.mulf %189, %185 : vector<8x128xf32>
      %191 = arith.addf %165, %185 : vector<8x128xf32>
      %192 = arith.addf %166, %189 : vector<8x128xf32>
      %193 = arith.addf %167, %190 : vector<8x128xf32>
      %c56 = arith.constant 56 : index
      %c0_68 = arith.constant 0 : index
      %194 = vector.load %arg2[%c56, %c0_68] : memref<64x128xf32, #tpu.memory_space<vmem>>, vector<8x128xf32>
      %c56_69 = arith.constant 56 : index
      %c0_70 = arith.constant 0 : index
      %195 = vector.load %arg3[%c56_69, %c0_70] : memref<64x128xf32, #tpu.memory_space<vmem>>, vector<8x128xf32>
      %cst_71 = arith.constant 5.000000e-01 : f32
      %196 = vector.broadcast %cst_71 : f32 to vector<8x128xf32>
      %197 = arith.mulf %196, %194 : vector<8x128xf32>
      %198 = math.tanh %197 : vector<8x128xf32>
      %cst_72 = arith.constant 1.000000e+00 : f32
      %199 = vector.broadcast %cst_72 : f32 to vector<8x128xf32>
      %200 = arith.addf %198, %199 : vector<8x128xf32>
      %cst_73 = arith.constant 5.000000e-01 : f32
      %201 = vector.broadcast %cst_73 : f32 to vector<8x128xf32>
      %202 = arith.mulf %201, %200 : vector<8x128xf32>
      %c56_i32 = arith.constant 56 : i32
      %203 = arith.addi %5, %c56_i32 : i32
      %c300_i32_74 = arith.constant 300 : i32
      %204 = arith.subi %c300_i32_74, %203 : i32
      %205 = tpu.iota {dimensions = array<i32: 0>} : vector<8x1xi32>
      %206 = vector.broadcast %204 : i32 to vector<8x1xi32>
      %207 = arith.cmpi slt, %205, %206 : vector<8x1xi32>
      %cst_75 = arith.constant 0.000000e+00 : f32
      %208 = vector.shape_cast %207 : vector<8x1xi1> to vector<8x1xi1>
      %209 = vector.broadcast %208 : vector<8x1xi1> to vector<8x128xi1>
      %210 = vector.broadcast %cst_75 : f32 to vector<8x128xf32>
      %211 = arith.select %209, %202, %210 : vector<8x128xi1>, vector<8x128xf32>
      %cst_76 = arith.constant 0.000000e+00 : f32
      %212 = vector.shape_cast %207 : vector<8x1xi1> to vector<8x1xi1>
      %213 = vector.broadcast %212 : vector<8x1xi1> to vector<8x128xi1>
      %214 = vector.broadcast %cst_76 : f32 to vector<8x128xf32>
      %215 = arith.select %213, %195, %214 : vector<8x128xi1>, vector<8x128xf32>
      %216 = arith.mulf %215, %211 : vector<8x128xf32>
      %217 = arith.addf %191, %211 : vector<8x128xf32>
      %218 = arith.addf %192, %215 : vector<8x128xf32>
      %219 = arith.addf %193, %216 : vector<8x128xf32>
      %c0_77 = arith.constant 0 : index
      %c0_78 = arith.constant 0 : index
      %220 = vector.load %arg7[%c0_77, %c0_78] : memref<8x128xf32, #tpu.memory_space<vmem>>, vector<8x128xf32>
      %221 = arith.addf %220, %217 : vector<8x128xf32>
      %c0_79 = arith.constant 0 : index
      %c0_80 = arith.constant 0 : index
      %222 = vector.load %arg7[%c0_79, %c0_80] : memref<8x128xf32, #tpu.memory_space<vmem>>, vector<8x128xf32>
      tpu.vector_store %arg7[%c0_79, %c0_80], %221 {strides = array<i32>} : memref<8x128xf32, #tpu.memory_space<vmem>>, vector<8x128xf32>,
      %c0_81 = arith.constant 0 : index
      %c0_82 = arith.constant 0 : index
      %223 = vector.load %arg8[%c0_81, %c0_82] : memref<8x128xf32, #tpu.memory_space<vmem>>, vector<8x128xf32>
      %224 = arith.addf %223, %218 : vector<8x128xf32>
      %c0_83 = arith.constant 0 : index
      %c0_84 = arith.constant 0 : index
      %225 = vector.load %arg8[%c0_83, %c0_84] : memref<8x128xf32, #tpu.memory_space<vmem>>, vector<8x128xf32>
      tpu.vector_store %arg8[%c0_83, %c0_84], %224 {strides = array<i32>} : memref<8x128xf32, #tpu.memory_space<vmem>>, vector<8x128xf32>,
      %c0_85 = arith.constant 0 : index
      %c0_86 = arith.constant 0 : index
      %226 = vector.load %arg9[%c0_85, %c0_86] : memref<8x128xf32, #tpu.memory_space<vmem>>, vector<8x128xf32>
      %227 = arith.addf %226, %219 : vector<8x128xf32>
      %c0_87 = arith.constant 0 : index
      %c0_88 = arith.constant 0 : index
      %228 = vector.load %arg9[%c0_87, %c0_88] : memref<8x128xf32, #tpu.memory_space<vmem>>, vector<8x128xf32>
      tpu.vector_store %arg9[%c0_87, %c0_88], %227 {strides = array<i32>} : memref<8x128xf32, #tpu.memory_space<vmem>>, vector<8x128xf32>,
    } else {
    }
    %c4_i32_4 = arith.constant 4 : i32
    %12 = arith.cmpi eq, %arg1, %c4_i32_4 : i32
    %13 = arith.extui %12 : i1 to i32
    %c0_i32_5 = arith.constant 0 : i32
    %14 = arith.cmpi ne, %13, %c0_i32_5 : i32
    scf.if %14 {
      %c0 = arith.constant 0 : index
      %c0_6 = arith.constant 0 : index
      %15 = vector.load %arg7[%c0, %c0_6] : memref<8x128xf32, #tpu.memory_space<vmem>>, vector<8x128xf32>
      %c0_7 = arith.constant 0 : index
      %c0_8 = arith.constant 0 : index
      %16 = vector.load %arg4[%c0_7, %c0_8] : memref<8x128xf32, #tpu.memory_space<vmem>>, vector<8x128xf32>
      tpu.vector_store %arg4[%c0_7, %c0_8], %15 {strides = array<i32>} : memref<8x128xf32, #tpu.memory_space<vmem>>, vector<8x128xf32>,
      %c0_9 = arith.constant 0 : index
      %c0_10 = arith.constant 0 : index
      %17 = vector.load %arg8[%c0_9, %c0_10] : memref<8x128xf32, #tpu.memory_space<vmem>>, vector<8x128xf32>
      %c0_11 = arith.constant 0 : index
      %c0_12 = arith.constant 0 : index
      %18 = vector.load %arg5[%c0_11, %c0_12] : memref<8x128xf32, #tpu.memory_space<vmem>>, vector<8x128xf32>
      tpu.vector_store %arg5[%c0_11, %c0_12], %17 {strides = array<i32>} : memref<8x128xf32, #tpu.memory_space<vmem>>, vector<8x128xf32>,
      %c0_13 = arith.constant 0 : index
      %c0_14 = arith.constant 0 : index
      %19 = vector.load %arg9[%c0_13, %c0_14] : memref<8x128xf32, #tpu.memory_space<vmem>>, vector<8x128xf32>
      %c0_15 = arith.constant 0 : index
      %c0_16 = arith.constant 0 : index
      %20 = vector.load %arg6[%c0_15, %c0_16] : memref<8x128xf32, #tpu.memory_space<vmem>>, vector<8x128xf32>
      tpu.vector_store %arg6[%c0_15, %c0_16], %19 {strides = array<i32>} : memref<8x128xf32, #tpu.memory_space<vmem>>, vector<8x128xf32>,
    } else {
    }
    return
  }
  func.func @transform_0(%arg0: i32, %arg1: i32) -> (i32, i32) {
    %c5_i32 = arith.constant 5 : i32
    %0 = arith.muli %arg0, %c5_i32 : i32
    %1 = arith.addi %0, %arg1 : i32
    %c4_i32 = arith.constant 4 : i32
    %2 = arith.minsi %1, %c4_i32 : i32
    %c0_i32 = arith.constant 0 : i32
    %c0_i32_0 = arith.constant 0 : i32
    return %2, %c0_i32 : i32, i32
  }
  func.func @transform_1(%arg0: i32, %arg1: i32) -> (i32, i32) {
    %c5_i32 = arith.constant 5 : i32
    %0 = arith.muli %arg0, %c5_i32 : i32
    %1 = arith.addi %0, %arg1 : i32
    %c4_i32 = arith.constant 4 : i32
    %2 = arith.minsi %1, %c4_i32 : i32
    %c0_i32 = arith.constant 0 : i32
    %c0_i32_0 = arith.constant 0 : i32
    return %2, %c0_i32 : i32, i32
  }
  func.func @transform_2(%arg0: i32, %arg1: i32) -> (i32, i32) {
    %c0_i32 = arith.constant 0 : i32
    %c0_i32_0 = arith.constant 0 : i32
    return %arg0, %c0_i32 : i32, i32
  }
  func.func @transform_3(%arg0: i32, %arg1: i32) -> (i32, i32) {
    %c0_i32 = arith.constant 0 : i32
    %c0_i32_0 = arith.constant 0 : i32
    return %arg0, %c0_i32 : i32, i32
  }
  func.func @transform_4(%arg0: i32, %arg1: i32) -> (i32, i32) {
    %c0_i32 = arith.constant 0 : i32
    %c0_i32_0 = arith.constant 0 : i32
    return %arg0, %c0_i32 : i32, i32
  }
}

</mosaic_0001>

<bundles_post_ra>
// kernel: tpu_custom_call.1
= control target key start
LH: loop header
LB: loop body
LE: loop exit
PB: predicated region body
PF: predicated region fallthrough
CT: control target
= control target key end

     0   :  { %10 = vsyncpa [#allocation6], 0  ;;  %s1470_s0 = inlined_call_operand.hbm [shape: f32[300,128], index: 0, kind: input, shape index: {}]   ;;  %s1471_s1 = inlined_call_operand.hbm [shape: f32[300,128], index: 1, kind: input, shape index: {}]   ;;  %s1472_s2 = inlined_call_operand.hbm [shape: f32[8,128], index: 2, kind: output, shape index: {0}]   ;;  %s1473_s3 = inlined_call_operand.hbm [shape: f32[8,128], index: 3, kind: output, shape index: {1}]   ;;  %s1474_s4 = inlined_call_operand.hbm [shape: f32[8,128], index: 4, kind: output, shape index: {2}]  }
   0x1   :  { %12 = vsyncpa [#allocation6 + $0x1], 0 }
   0x2   :  { %13 = vsyncpa [#allocation9], 0 }
   0x3   :  { %15 = vsyncpa [#allocation9 + $0x1], 0 }
   0x4   :  { %16 = vsyncpa [#allocation7], 0 }
   0x5   :  { %17 = vsyncpa [#allocation12], 0  ;;  %s1099_s15 = smov 0   ;;  %s1101_s16 = smov 0  }
   0x6   :  { %s1103_s17 = smov 0   ;;  %s1105_s18 = smov 0  }
   0x7   :  { %s1107_s19 = smov 0   ;;  %s1109_s20 = smov 0  }
   0x8 LB: > { %s32_s21 = sadd.s32 1, %s1058_s19  ;;  %p41_p1 = scmp.lt.s32.totalorder %s1058_s19, 4  ;;  %s1062_s20 = sphi %s1109_s20, %s23_s20   ;;  %s1058_s19 = sphi %s1107_s19, %s1482_s19   ;;  %s1054_s18 = sphi %s1105_s18, %s1481_s18   ;;  %s1050_s17 = sphi %s1103_s17, %s1480_s17   ;;  %s1046_s16 = sphi %s1101_s16, %s1479_s16   ;;  %s1042_s15 = sphi %s1099_s15, %s1478_s15  }
   0x9   : > { %p33_p0 = scmp.ge.s32.totalorder %s32_s21, 5  ;;  %s723_s22 = sadd.s32 4294967295, %s1062_s20  }
   0xa   : > { %p57_p2 = scmp.ne.s32.totalorder %s1050_s17, %s1046_s16  ;;  %p58_p4 = scmp.eq.s32.totalorder %s1062_s20, 0 }
   0xb   : > { %s1484_s21 = smov (%p33_p0, %s32_s21), 0  ;;  %p63_p5 = scmp.ne.s32.totalorder %s1046_s16, %s1042_s15 }
   0xc   : > { %s1135_s23 = scalar_select %p41_p1, %s1058_s19, 4 }
   0xd   : > { %p45_p3 = scmp.lt.s32.totalorder %s1484_s21, 4  ;;  %p64_p6 = scmp.eq.s32.totalorder %s723_s22, 0 }
   0xe   : > { %p1143_p7 = por %p58_p4, %p57_p2  ;;  %s50_s28 = sadd.s32 1, %s1050_s17 }
   0xf   : > { %s46_s24 = scalar_select %p45_p3, %s1484_s21, 4 }
  0x10   : > { %p1147_p8 = por %p64_p6, %p63_p5  ;;  %p725_p10 = scmp.ge.s32.totalorder %s1062_s20, 5 }
  0x11   : > { %s47_s27 = ssub.s32 %s1135_s23, %s46_s24 }
  0x12   : > { %p48_p9 = scmp.eq.s32.totalorder %s47_s27, 0  ;;  %195 = sbr.rel (%p725_p10) target bundleno = 95 (0x5f), region = 16 }
  0x14   : > { %s1154_s29 = scalar_select %p48_p9, %s1050_s17, %s50_s28  }
  0x19   : > { %198 = sbr.rel (!%p1143_p7) target bundleno = 60 (0x3c), region = 20  ;;  %s199_s30 = sand.u32 (%p1143_p7), 1, %s1050_s17  }
  0x1a   : > { %s727_s5 = sshll.u32 (%p1143_p7), %s1135_s23, 3  ;;  %s726_s6 = sshll.u32 (%p1143_p7), %s199_s30, 6 }
  0x1b   : > { %s209_s7 = ssub.s32 (%p1143_p7), 38, %s727_s5  ;;  %s1164_s10 = scalar_lea.sflag (%p1143_p7), [#allocation6], %s199_s30 }
  0x1c   : > { %p210_p11 = scmp.lt.s32.totalorder (%p1143_p7), %s209_s7, 8  ;;  %s203_s11 = scalar_lea.vmem (%p1143_p7), [#allocation5], %s726_s6 }
  0x20   : > { %s1486_s7 = smov (!%p210_p11, %s209_s7), 8 }
  0x21   : > { %s1161_s8 = sshll.u32 %s1486_s7, 7 }
  0x22   : > { %s214_s9 = ssub.s32 1024, %s1161_s8 }
  0x23   : > { %215 = vsyncadd %s1164_s10, %s214_s9  ;;  %p729_p12 = scmp.ne.s32.totalorder %s1161_s8, 0  ;;  %s756_s12 = sshll.u32 %s1135_s23, 10 }
  0x24   : > { %s1172_s15 = scalar_lea.hbm %s1470_s0, %s756_s12  ;;  %s220_s24 = sshll.u32 %s203_s11, 4  ;;  %s1174_s24 = int_to_ptr.vmem [resolvable:$true] %s220_s24 }
  0x25   : > { %s866_s27 = scalar_lea.hbm %s1172_s15, %s1161_s8  ;;  %s870_s5 = scalar_lea.hbm %s1470_s0, 4864 }
  0x26   : > { %p867_p13 = scmp.ne.s32.totalorder %s1172_s15, %s866_s27  ;;  %p871_p2 = scmp.lt.u32.totalorder %s1172_s15, %s1470_s0 }
  0x27   : > { %p872_p3 = scmp.lt.u32.totalorder %s870_s5, %s866_s27  ;;  %p874_p5 = scmp.lt.u32.totalorder %s866_s27, %s1172_s15 }
  0x28   : > { %p868_p0 = pnand %p867_p13, %p729_p12 }
  0x29   : > { %p873_p4 = por %p872_p3, %p871_p2 }
  0x2a   : > { %p869_p1 = pneg %p868_p0 }
  0x2b   : > { %p875_p6 = por %p874_p5, %p873_p4 }
  0x2d   : > { %p876_p9 = pnand %p875_p6, %p869_p1 }
  0x2f   : > { %879 = shalt.err (!%p876_p9)
}
  0x30   : > { %s880_s9 = scalar_lea.vmem %s1174_s24, %s1161_s8  ;;  %s1064_s11 = smov [#allocation5]  }
  0x31   : > { %p881_p10 = scmp.ne.s32.totalorder %s1174_s24, %s880_s9  ;;  %s884_s12 = sshll.u32 %s1064_s11, 4  ;;  %s885_s12 = int_to_ptr.vmem [resolvable:$false] %s884_s12 }
  0x32   : > { %s886_s13 = scalar_lea.vmem %s885_s12, 2048  ;;  %p887_p0 = scmp.lt.s32.totalorder %s1174_s24, %s885_s12 }
  0x33   : > { %p882_p11 = pnand %p881_p10, %p729_p12  ;;  %p888_p2 = scmp.lt.s32.totalorder %s886_s13, %s880_s9 }
  0x35   : > { %p883_p13 = pneg %p882_p11  ;;  %p889_p3 = por %p888_p2, %p887_p0 }
  0x37   : > { %p890_p4 = pnand %p889_p3, %p883_p13 }
  0x39   : > { %893 = shalt.err (!%p890_p4)
}
  0x3a   : > { %s1065_s14 = smov 128   ;;  %s1066_s27 = smov 8  }
  0x3b   : > { %226 = dma.hbm_to_vmem [thread:$0]  (%p729_p12), %s1172_s15, %s1161_s8, %s1174_s24, %s1164_s10, %s1065_s14, %s1065_s14, %s1066_s27  }
  0x3c PF: > { %229 = sbr.rel (!%p1143_p7) target bundleno = 95 (0x5f), region = 24  ;;  %s230_s28 = sand.u32 (%p1143_p7), 1, %s1050_s17  }
  0x3d   : > { %s734_s30 = sshll.u32 (%p1143_p7), %s1135_s23, 3  ;;  %s733_s5 = sshll.u32 (%p1143_p7), %s230_s28, 6 }
  0x3e   : > { %s240_s6 = ssub.s32 (%p1143_p7), 38, %s734_s30  ;;  %s1208_s11 = scalar_lea.sflag (%p1143_p7), [#allocation9], %s230_s28 }
  0x3f   : > { %p241_p1 = scmp.lt.s32.totalorder (%p1143_p7), %s240_s6, 8  ;;  %s234_s8 = scalar_lea.vmem (%p1143_p7), [#allocation8], %s733_s5 }
  0x43   : > { %s1488_s6 = smov (!%p241_p1, %s240_s6), 8 }
  0x44   : > { %s1205_s7 = sshll.u32 %s1488_s6, 7 }
  0x45   : > { %s245_s9 = ssub.s32 1024, %s1205_s7 }
  0x46   : > { %246 = vsyncadd %s1208_s11, %s245_s9  ;;  %p736_p7 = scmp.ne.s32.totalorder %s1205_s7, 0  ;;  %s757_s25 = sshll.u32 %s1135_s23, 10 }
  0x47   : > { %s1216_s24 = scalar_lea.hbm %s1471_s1, %s757_s25  ;;  %s251_s12 = sshll.u32 %s234_s8, 4  ;;  %s1218_s12 = int_to_ptr.vmem [resolvable:$true] %s251_s12 }
  0x48   : > { %s894_s13 = scalar_lea.hbm %s1216_s24, %s1205_s7  ;;  %s898_s23 = scalar_lea.hbm %s1471_s1, 4864 }
  0x49   : > { %p895_p12 = scmp.ne.s32.totalorder %s1216_s24, %s894_s13  ;;  %p899_p9 = scmp.lt.u32.totalorder %s1216_s24, %s1471_s1 }
  0x4a   : > { %p900_p10 = scmp.lt.u32.totalorder %s898_s23, %s894_s13  ;;  %p902_p13 = scmp.lt.u32.totalorder %s894_s13, %s1216_s24 }
  0x4b   : > { %p896_p5 = pnand %p895_p12, %p736_p7 }
  0x4c   : > { %p901_p11 = por %p900_p10, %p899_p9 }
  0x4d   : > { %p897_p6 = pneg %p896_p5 }
  0x4e   : > { %p903_p0 = por %p902_p13, %p901_p11 }
  0x50   : > { %p904_p2 = pnand %p903_p0, %p897_p6 }
  0x52   : > { %907 = shalt.err (!%p904_p2)
}
  0x53   : > { %s908_s5 = scalar_lea.vmem %s1218_s12, %s1205_s7  ;;  %s1067_s6 = smov [#allocation8]  }
  0x54   : > { %p909_p3 = scmp.ne.s32.totalorder %s1218_s12, %s908_s5  ;;  %s912_s9 = sshll.u32 %s1067_s6, 4  ;;  %s913_s9 = int_to_ptr.vmem [resolvable:$false] %s912_s9 }
  0x55   : > { %s914_s8 = scalar_lea.vmem %s913_s9, 2048  ;;  %p915_p12 = scmp.lt.s32.totalorder %s1218_s12, %s913_s9 }
  0x56   : > { %p910_p4 = pnand %p909_p3, %p736_p7  ;;  %p916_p5 = scmp.lt.s32.totalorder %s914_s8, %s908_s5 }
  0x58   : > { %p911_p1 = pneg %p910_p4  ;;  %p917_p9 = por %p916_p5, %p915_p12 }
  0x5a   : > { %p918_p10 = pnand %p917_p9, %p911_p1 }
  0x5c   : > { %921 = shalt.err (!%p918_p10)
}
  0x5d   : > { %s1068_s25 = smov 128   ;;  %s1069_s10 = smov 8  }
  0x5e   : > { %257 = dma.hbm_to_vmem [thread:$0]  (%p736_p7), %s1216_s24, %s1205_s7, %s1218_s12, %s1208_s11, %s1068_s25, %s1068_s25, %s1069_s10  }
  0x5f PF: > { %p740_p6 = scmp.ge.s32.totalorder %s1062_s20, 1  ;;  %p259_p11 = scmp.lt.s32.totalorder %s1062_s20, 6 }
  0x61   : > { %p260_p13 = pnand %p740_p6, %p259_p11 }
  0x62   : > { %s265_s15 = sand.u32 (!%p260_p13), 1, %s1046_s16  }
  0x63   : > { %263 = sbr.rel (%p260_p13) target bundleno = 279 (0x117), region = 28  ;;  %s741_s13 = sshll.u32 (!%p260_p13), %s265_s15, 6 }
  0x64   : > { %s266_s14 = scalar_lea.sflag (!%p260_p13), [#allocation6], %s265_s15  ;;  %s1248_s27 = scalar_lea.vmem (!%p260_p13), [#allocation5], %s741_s13 }
  0x6a   : > { %1025 = dma.done.wait (%p1147_p8), %s266_s14, 1024  }
  0x6b   : > { %1027 = vsyncadd (%p1147_p8), %s266_s14, 4294966272  ;;  %s275_s7 = scalar_lea.sflag [#allocation9], %s265_s15  ;;  %s1254_s11 = scalar_lea.vmem [#allocation8], %s741_s13 }
  0x6c   : > { %1029 = dma.done.wait (%p1147_p8), %s275_s7, 1024  }
  0x6d   : > { %1031 = vsyncadd (%p1147_p8), %s275_s7, 4294966272  ;;  %p743_p7 = scmp.ne.s32.totalorder %s1054_s18, 0 }
  0x6e   : > { %v1070_v0 = vmov (!%p743_p7), 0.0  }
  0x6f   : > { %324 = sbr.rel (%p743_p7) target bundleno = 118 (0x76), region = 40  ;;  %325 = vst [vmem:[#allocation2] sm:$0xff] (!%p743_p7), %v1070_v0  ;;  %326 = vst [vmem:[#allocation3] sm:$0xff] (!%p743_p7), %v1070_v0 }
  0x70   : > { %327 = vst [vmem:[#allocation4] sm:$0xff] (!%p743_p7), %v1070_v0 }
  0x76 PF: > { %s1262_s24 = sshll.u32 %s1054_s18, 6  ;;  %p745_p0 = scmp.ge.s32.totalorder %s1054_s18, 4 }
  0x77   : > { %v335_v1 = vld [vmem:[%s1248_s27] sm:$0xff] (!%p745_p0)  ;;  %v342_v2 = vld [vmem:[%s1248_s27 + $0x8] sm:$0xff] (!%p745_p0)  ;;  %v352_v3 = vld [vmem:[%s1248_s27 + $0x10] sm:$0xff] (!%p745_p0) }
  0x78   : > { %334 = sbr.rel (%p745_p0) target bundleno = 157 (0x9d), region = 44  ;;  %v337_v4 = vmul.f32 (!%p745_p0), 0.5, %v335_v1  ;;  %v344_v5 = vmul.f32 (!%p745_p0), 0.5, %v342_v2  ;;  %v354_v6 = vmul.f32 (!%p745_p0), 0.5, %v352_v3  ;;  %v362_v7 = vld [vmem:[%s1248_s27 + $0x18] sm:$0xff] (!%p745_p0)  ;;  %v372_v8 = vld [vmem:[%s1248_s27 + $0x20] sm:$0xff] (!%p745_p0) }
  0x79   : > { %v382_v9 = vld [vmem:[%s1248_s27 + $0x28] sm:$0xff] (!%p745_p0)  ;;  %v364_v10 = vmul.f32 (!%p745_p0), 0.5, %v362_v7  ;;  %v392_v11 = vld [vmem:[%s1248_s27 + $0x30] sm:$0xff] (!%p745_p0)  ;;  %v374_v12 = vmul.f32 (!%p745_p0), 0.5, %v372_v8  ;;  %v402_v13 = vld [vmem:[%s1248_s27 + $0x38] sm:$0xff] (!%p745_p0) }
  0x7a   : > { %834 = vtanh.f32 (!%p745_p0), %v337_v4  ;;  %v336_v14 = vld [vmem:[%s1254_s11] sm:$0xff] (!%p745_p0)  ;;  %v343_v15 = vld [vmem:[%s1254_s11 + $0x8] sm:$0xff] (!%p745_p0)  ;;  %v384_v16 = vmul.f32 (!%p745_p0), 0.5, %v382_v9  ;;  %v394_v18 = vmul.f32 (!%p745_p0), 0.5, %v392_v11  ;;  %v353_v19 = vld [vmem:[%s1254_s11 + $0x10] sm:$0xff] (!%p745_p0)  ;;  %v404_v20 = vmul.f32 (!%p745_p0), 0.5, %v402_v13 }
  0x7b   : > { %836 = vtanh.f32 (!%p745_p0), %v344_v5  ;;  %v350_v17 = vadd.f32 (!%p745_p0), %v343_v15, %v336_v14  ;;  %v363_v22 = vld [vmem:[%s1254_s11 + $0x18] sm:$0xff] (!%p745_p0)  ;;  %v373_v24 = vld [vmem:[%s1254_s11 + $0x20] sm:$0xff] (!%p745_p0)  ;;  %v383_v26 = vld [vmem:[%s1254_s11 + $0x28] sm:$0xff] (!%p745_p0) }
  0x7c   : > { %838 = vtanh.f32 (!%p745_p0), %v354_v6  ;;  %v393_v29 = vld [vmem:[%s1254_s11 + $0x30] sm:$0xff] (!%p745_p0)  ;;  %v403_v35 = vld [vmem:[%s1254_s11 + $0x38] sm:$0xff] (!%p745_p0)  ;;  %v412_v13 = vld [vmem:[#allocation2] sm:$0xff] (!%p745_p0) }
  0x7d   : > { %840 = vtanh.f32 (!%p745_p0), %v364_v10  ;;  %v360_v21 = vadd.f32 (!%p745_p0), %v353_v19, %v350_v17  ;;  %v415_v36 = vld [vmem:[#allocation3] sm:$0xff] (!%p745_p0) }
  0x7e   : > { %842 = vtanh.f32 (!%p745_p0), %v374_v12 }
  0x7f   : > { %844 = vtanh.f32 %v384_v16  ;;  %v370_v23 = vadd.f32 %v363_v22, %v360_v21  ;;  %v418_v16 = vld [vmem:[#allocation4] sm:$0xff] }
  0x80   : > { %846 = vtanh.f32 %v394_v18 }
  0x81   : > { %848 = vtanh.f32 %v404_v20  ;;  %v380_v25 = vadd.f32 %v373_v24, %v370_v23 }
  0x83   : > { %v390_v27 = vadd.f32 %v383_v26, %v380_v25 }
  0x84   : > { %v835_v28 = vpop.eup %834 }
  0x85   : > { %v837_v30 = vpop.eup %836  ;;  %v339_v31 = vadd.f32 1.0, %v835_v28  ;;  %v400_v32 = vadd.f32 %v393_v29, %v390_v27 }
  0x86   : > { %v839_v33 = vpop.eup %838  ;;  %v346_v34 = vadd.f32 1.0, %v837_v30 }
  0x87   : > { %v841_v37 = vpop.eup %840  ;;  %v340_v38 = vmul.f32 0.5, %v339_v31  ;;  %v356_v39 = vadd.f32 1.0, %v839_v33  ;;  %v410_v40 = vadd.f32 %v403_v35, %v400_v32 }
  0x88   : > { %v843_v41 = vpop.eup %842  ;;  %v347_v42 = vmul.f32 0.5, %v346_v34  ;;  %v366_v43 = vadd.f32 1.0, %v841_v37 }
  0x89   : > { %v845_v44 = vpop.eup %844  ;;  %v357_v45 = vmul.f32 0.5, %v356_v39  ;;  %v376_v46 = vadd.f32 1.0, %v843_v41  ;;  %v416_v47 = vadd.f32 %v415_v36, %v410_v40  ;;  %v341_v48 = vmul.f32 %v340_v38, %v336_v14 }
  0x8a   : > { %v847_v49 = vpop.eup %846  ;;  %v349_v50 = vadd.f32 %v347_v42, %v340_v38  ;;  %v367_v51 = vmul.f32 0.5, %v366_v43  ;;  %v386_v52 = vadd.f32 1.0, %v845_v44  ;;  %v348_v53 = vmul.f32 %v347_v42, %v343_v15 }
  0x8b   : > { %v849_v54 = vpop.eup %848  ;;  %v377_v55 = vmul.f32 0.5, %v376_v46  ;;  %v396_v56 = vadd.f32 1.0, %v847_v49  ;;  %417 = vst [vmem:[#allocation3] sm:$0xff] %v416_v47  ;;  %v358_v57 = vmul.f32 %v357_v45, %v353_v19 }
  0x8c   : > { %v359_v58 = vadd.f32 %v357_v45, %v349_v50  ;;  %v387_v59 = vmul.f32 0.5, %v386_v52  ;;  %v406_v60 = vadd.f32 1.0, %v849_v54  ;;  %v351_v61 = vadd.f32 %v348_v53, %v341_v48 }
  0x8d   : > { %v368_v62 = vmul.f32 %v367_v51, %v363_v22  ;;  %v397_v0 = vmul.f32 0.5, %v396_v56  ;;  %v378_v2 = vmul.f32 %v377_v55, %v373_v24 }
  0x8e   : > { %v369_v63 = vadd.f32 %v367_v51, %v359_v58  ;;  %v361_v1 = vadd.f32 %v358_v57, %v351_v61  ;;  %v407_v4 = vmul.f32 0.5, %v406_v60  ;;  %v388_v6 = vmul.f32 %v387_v59, %v383_v26 }
  0x8f   : > { %v398_v9 = vmul.f32 %v397_v0, %v393_v29 }
  0x90   : > { %v379_v3 = vadd.f32 %v377_v55, %v369_v63  ;;  %v371_v5 = vadd.f32 %v368_v62, %v361_v1  ;;  %v408_v12 = vmul.f32 %v407_v4, %v403_v35 }
  0x92   : > { %v389_v7 = vadd.f32 %v387_v59, %v379_v3  ;;  %v381_v8 = vadd.f32 %v378_v2, %v371_v5 }
  0x94   : > { %v399_v10 = vadd.f32 %v397_v0, %v389_v7  ;;  %v391_v11 = vadd.f32 %v388_v6, %v381_v8 }
  0x96   : > { %v409_v14 = vadd.f32 %v407_v4, %v399_v10  ;;  %v401_v15 = vadd.f32 %v398_v9, %v391_v11 }
  0x98   : > { %v413_v17 = vadd.f32 %v412_v13, %v409_v14  ;;  %v411_v18 = vadd.f32 %v408_v12, %v401_v15 }
  0x9a   : > { %414 = vst [vmem:[#allocation2] sm:$0xff] %v413_v17  ;;  %v419_v19 = vadd.f32 %v418_v16, %v411_v18 }
  0x9c   : > { %420 = vst [vmem:[#allocation4] sm:$0xff] %v419_v19 }
  0x9d PF: > { %p746_p8 = scmp.lt.s32.totalorder %s1054_s18, 4 }
  0x9e   : > { %v425_v20 = vld [vmem:[%s1248_s27] sm:$0xff] (!%p746_p8)  ;;  %s431_s26 = ssub.s32 (!%p746_p8), 300, %s1262_s24  ;;  %v432_v21 = vlaneseq (!%p746_p8)  ;;  %v441_v22 = vld [vmem:[%s1248_s27 + $0x8] sm:$0xff] (!%p746_p8)  ;;  %s447_s12 = ssub.s32 (!%p746_p8), 292, %s1262_s24  ;;  %v458_v23 = vld [vmem:[%s1248_s27 + $0x10] sm:$0xff] (!%p746_p8) }
  0x9f   : > { %424 = sbr.rel (%p746_p8) target bundleno = 199 (0xc7), region = 48  ;;  %v427_v24 = vmul.f32 (!%p746_p8), 0.5, %v425_v20  ;;  %v1287_v25 = vstv (!%p746_p8), %s431_s26  ;;  %v443_v26 = vmul.f32 (!%p746_p8), 0.5, %v441_v22  ;;  %s464_s23 = ssub.s32 (!%p746_p8), 284, %s1262_s24  ;;  %v475_v27 = vld [vmem:[%s1248_s27 + $0x18] sm:$0xff] (!%p746_p8)  ;;  %v492_v28 = vld [vmem:[%s1248_s27 + $0x20] sm:$0xff] (!%p746_p8)  ;;  %v1294_v30 = vstv (!%p746_p8), %s447_s12 }
  0xa0   : > { %v1292_v29 = vshrl.u32 (!%p746_p8), %v432_v21, 7  ;;  %v460_v31 = vmul.f32 (!%p746_p8), 0.5, %v458_v23  ;;  %v477_v32 = vmul.f32 (!%p746_p8), 0.5, %v475_v27  ;;  %v509_v33 = vld [vmem:[%s1248_s27 + $0x28] sm:$0xff] (!%p746_p8)  ;;  %s481_s28 = ssub.s32 (!%p746_p8), 276, %s1262_s24  ;;  %v494_v34 = vmul.f32 (!%p746_p8), 0.5, %v492_v28 }
  0xa1   : > { %850 = vtanh.f32 (!%p746_p8), %v427_v24  ;;  %v526_v35 = vld [vmem:[%s1248_s27 + $0x30] sm:$0xff] (!%p746_p8)  ;;  %v1299_v36 = vstv (!%p746_p8), %s464_s23  ;;  %v543_v37 = vld [vmem:[%s1248_s27 + $0x38] sm:$0xff] (!%p746_p8)  ;;  %s498_s30 = ssub.s32 (!%p746_p8), 268, %s1262_s24  ;;  %v511_v38 = vmul.f32 (!%p746_p8), 0.5, %v509_v33  ;;  %v426_v39 = vld [vmem:[%s1254_s11] sm:$0xff] (!%p746_p8)  ;;  %s515_s5 = ssub.s32 (!%p746_p8), 260, %s1262_s24 }
  0xa2   : > { %852 = vtanh.f32 (!%p746_p8), %v443_v26  ;;  %vm435_vm0 = vcmp.lt.s32.totalorder (!%p746_p8), %v1292_v29, %v1287_v25  ;;  %vm449_vm1 = vcmp.lt.s32.totalorder (!%p746_p8), %v1292_v29, %v1294_v30  ;;  %v442_v40 = vld [vmem:[%s1254_s11 + $0x8] sm:$0xff] (!%p746_p8)  ;;  %v1309_v41 = vstv (!%p746_p8), %s481_s28  ;;  %v459_v44 = vld [vmem:[%s1254_s11 + $0x10] sm:$0xff] (!%p746_p8)  ;;  %s532_s6 = ssub.s32 (!%p746_p8), 252, %s1262_s24  ;;  %v476_v49 = vld [vmem:[%s1254_s11 + $0x18] sm:$0xff] (!%p746_p8)  ;;  %s549_s9 = ssub.s32 (!%p746_p8), 244, %s1262_s24 }
  0xa3   : > { %854 = vtanh.f32 (!%p746_p8), %v460_v31  ;;  %v528_v42 = vmul.f32 (!%p746_p8), 0.5, %v526_v35  ;;  %vm466_vm2 = vcmp.lt.s32.totalorder (!%p746_p8), %v1292_v29, %v1299_v36  ;;  %v545_v43 = vmul.f32 (!%p746_p8), 0.5, %v543_v37  ;;  %v493_v53 = vld [vmem:[%s1254_s11 + $0x20] sm:$0xff] (!%p746_p8)  ;;  %v510_v58 = vld [vmem:[%s1254_s11 + $0x28] sm:$0xff] (!%p746_p8)  ;;  %v527_v2 = vld [vmem:[%s1254_s11 + $0x30] sm:$0xff] (!%p746_p8) }
  0xa4   : > { %856 = vtanh.f32 (!%p746_p8), %v477_v32  ;;  %v1315_v45 = vstv (!%p746_p8), %s498_s30  ;;  %v439_v46 = vsel (!%p746_p8), %vm435_vm0, %v426_v39, 0.0  ;;  %v453_v47 = vsel (!%p746_p8), %vm449_vm1, %v442_v40, 0.0  ;;  %v544_v11 = vld [vmem:[%s1254_s11 + $0x38] sm:$0xff] (!%p746_p8)  ;;  %v563_v27 = vld [vmem:[#allocation3] sm:$0xff] (!%p746_p8) }
  0xa5   : > { %858 = vtanh.f32 (!%p746_p8), %v494_v34  ;;  %vm483_vm3 = vcmp.lt.s32.totalorder (!%p746_p8), %v1292_v29, %v1309_v41  ;;  %v456_v48 = vadd.f32 (!%p746_p8), %v453_v47, %v439_v46  ;;  %v1327_v50 = vstv (!%p746_p8), %s515_s5 }
  0xa6   : > { %860 = vtanh.f32 %v511_v38  ;;  %v470_v51 = vsel %vm466_vm2, %v459_v44, 0.0  ;;  %vm500_vm4 = vcmp.lt.s32.totalorder %v1292_v29, %v1315_v45  ;;  %v1336_v54 = vstv %s532_s6 }
  0xa7   : > { %862 = vtanh.f32 %v528_v42  ;;  %v473_v52 = vadd.f32 %v470_v51, %v456_v48  ;;  %v487_v55 = vsel %vm483_vm3, %v476_v49, 0.0  ;;  %vm517_vm5 = vcmp.lt.s32.totalorder %v1292_v29, %v1327_v50 }
  0xa8   : > { %864 = vtanh.f32 %v545_v43  ;;  %v550_v61 = vstv %s549_s9  ;;  %v504_v62 = vsel %vm500_vm4, %v493_v53, 0.0  ;;  %vm534_vm6 = vcmp.lt.s32.totalorder %v1292_v29, %v1336_v54 }
  0xa9   : > { %v490_v57 = vadd.f32 %v487_v55, %v473_v52  ;;  %v521_v6 = vsel %vm517_vm5, %v510_v58, 0.0  ;;  %vm551_vm7 = vcmp.lt.s32.totalorder %v1292_v29, %v550_v61  ;;  %v538_v16 = vsel %vm534_vm6, %v527_v2, 0.0 }
  0xaa   : > { %v555_v25 = vsel %vm551_vm7, %v544_v11, 0.0 }
  0xab   : > { %v851_v56 = vpop.eup %850  ;;  %v507_v1 = vadd.f32 %v504_v62, %v490_v57 }
  0xac   : > { %v853_v59 = vpop.eup %852  ;;  %v429_v60 = vadd.f32 1.0, %v851_v56 }
  0xad   : > { %v855_v63 = vpop.eup %854  ;;  %v445_v0 = vadd.f32 1.0, %v853_v59  ;;  %v524_v10 = vadd.f32 %v521_v6, %v507_v1 }
  0xae   : > { %v857_v3 = vpop.eup %856  ;;  %v430_v4 = vmul.f32 0.5, %v429_v60  ;;  %v462_v5 = vadd.f32 1.0, %v855_v63 }
  0xaf   : > { %v859_v7 = vpop.eup %858  ;;  %v446_v8 = vmul.f32 0.5, %v445_v0  ;;  %v479_v9 = vadd.f32 1.0, %v857_v3  ;;  %v541_v21 = vadd.f32 %v538_v16, %v524_v10 }
  0xb0   : > { %v861_v12 = vpop.eup %860  ;;  %v438_v13 = vsel %vm435_vm0, %v430_v4, 0.0  ;;  %v463_v14 = vmul.f32 0.5, %v462_v5  ;;  %v496_v15 = vadd.f32 1.0, %v859_v7 }
  0xb1   : > { %v863_v17 = vpop.eup %862  ;;  %v452_v18 = vsel %vm449_vm1, %v446_v8, 0.0  ;;  %v480_v19 = vmul.f32 0.5, %v479_v9  ;;  %v513_v20 = vadd.f32 1.0, %v861_v12  ;;  %v558_v31 = vadd.f32 %v555_v25, %v541_v21 }
  0xb2   : > { %v865_v22 = vpop.eup %864  ;;  %v455_v23 = vadd.f32 %v452_v18, %v438_v13  ;;  %v497_v24 = vmul.f32 0.5, %v496_v15  ;;  %v530_v26 = vadd.f32 1.0, %v863_v17  ;;  %v469_v28 = vsel %vm466_vm2, %v463_v14, 0.0 }
  0xb3   : > { %v486_v30 = vsel %vm483_vm3, %v480_v19, 0.0  ;;  %v514_v33 = vmul.f32 0.5, %v513_v20  ;;  %v547_v34 = vadd.f32 1.0, %v865_v22  ;;  %v440_v35 = vmul.f32 %v439_v46, %v438_v13 }
  0xb4   : > { %v472_v32 = vadd.f32 %v469_v28, %v455_v23  ;;  %v564_v37 = vadd.f32 %v563_v27, %v558_v31  ;;  %v454_v38 = vmul.f32 %v453_v47, %v452_v18  ;;  %v503_v40 = vsel %vm500_vm4, %v497_v24, 0.0 }
  0xb5   : > { %v531_v42 = vmul.f32 0.5, %v530_v26  ;;  %v471_v43 = vmul.f32 %v470_v51, %v469_v28  ;;  %v488_v44 = vmul.f32 %v487_v55, %v486_v30  ;;  %v520_v41 = vsel %vm517_vm5, %v514_v33, 0.0  ;;  %v560_v55 = vld [vmem:[#allocation2] sm:$0xff] }
  0xb6   : > { %v489_v39 = vadd.f32 %v486_v30, %v472_v32  ;;  %565 = vst [vmem:[#allocation3] sm:$0xff] %v564_v37  ;;  %v457_v36 = vadd.f32 %v454_v38, %v440_v35  ;;  %v548_v49 = vmul.f32 0.5, %v547_v34  ;;  %v505_v46 = vmul.f32 %v504_v62, %v503_v40  ;;  %v566_v62 = vld [vmem:[#allocation4] sm:$0xff] }
  0xb7   : > { %v537_v47 = vsel %vm534_vm6, %v531_v42, 0.0  ;;  %v522_v56 = vmul.f32 %v521_v6, %v520_v41 }
  0xb8   : > { %v506_v48 = vadd.f32 %v503_v40, %v489_v39  ;;  %v474_v52 = vadd.f32 %v471_v43, %v457_v36  ;;  %v554_v51 = vsel %vm551_vm7, %v548_v49, 0.0  ;;  %v539_v59 = vmul.f32 %v538_v16, %v537_v47 }
  0xb9   : > { %v556_v63 = vmul.f32 %v555_v25, %v554_v51 }
  0xba   : > { %v523_v53 = vadd.f32 %v520_v41, %v506_v48  ;;  %v491_v45 = vadd.f32 %v488_v44, %v474_v52 }
  0xbc   : > { %v540_v57 = vadd.f32 %v537_v47, %v523_v53  ;;  %v508_v58 = vadd.f32 %v505_v46, %v491_v45 }
  0xbe   : > { %v557_v60 = vadd.f32 %v554_v51, %v540_v57  ;;  %v525_v50 = vadd.f32 %v522_v56, %v508_v58 }
  0xc0   : > { %v561_v0 = vadd.f32 %v560_v55, %v557_v60  ;;  %v542_v1 = vadd.f32 %v539_v59, %v525_v50 }
  0xc2   : > { %562 = vst [vmem:[#allocation2] sm:$0xff] %v561_v0  ;;  %v559_v2 = vadd.f32 %v556_v63, %v542_v1 }
  0xc4   : > { %v567_v3 = vadd.f32 %v566_v62, %v559_v2 }
  0xc6   : > { %568 = vst [vmem:[#allocation4] sm:$0xff] %v567_v3 }
  0xc7 PF: > { %p747_p2 = scmp.ne.s32.totalorder %s1054_s18, 4 }
  0xc8   : > { %v575_v29 = vld [vmem:[#allocation3] sm:$0xff] (!%p747_p2) }
  0xc9   : > { %572 = sbr.rel (%p747_p2) target bundleno = 208 (0xd0), region = 52  ;;  %v573_v54 = vld [vmem:[#allocation2] sm:$0xff] (!%p747_p2)  ;;  %576 = vst [vmem:[#allocation11] sm:$0xff] (!%p747_p2), %v575_v29 }
  0xca   : > { %574 = vst [vmem:[#allocation10] sm:$0xff] (!%p747_p2), %v573_v54 }
  0xcd   : > { %v577_v61 = vld [vmem:[#allocation4] sm:$0xff] (!%p747_p2) }
  0xce   : > { %578 = vst [vmem:[#allocation13] sm:$0xff] (!%p747_p2), %v577_v61 }
  0xd0 PF: > { %p1386_p3 = scmp.eq.s32.totalorder %s723_s22, 4  ;;  %s1071_s25 = smov [#allocation11]  }
  0xd1   : > { %s601_s10 = sshll.u32 %s1071_s25, 4  ;;  %s602_s10 = int_to_ptr.vmem [resolvable:$true] %s601_s10 }
  0xd2   : > { %s922_s15 = scalar_lea.vmem %s602_s10, 128  ;;  %p929_p5 = scmp.lt.s32.totalorder %s602_s10, %s602_s10 }
  0xd3   : > { %p923_p4 = scmp.ne.s32.totalorder %s602_s10, %s922_s15  ;;  %p930_p9 = scmp.lt.s32.totalorder %s922_s15, %s922_s15 }
  0xd5   : > { %p924_p1 = pnand %p923_p4, %p1386_p3  ;;  %p931_p10 = por %p930_p9, %p929_p5 }
  0xd7   : > { %p925_p12 = pneg %p924_p1 }
  0xd9   : > { %p932_p6 = pnand %p931_p10, %p925_p12 }
  0xdb   : > { %935 = shalt.err (!%p932_p6)
}
  0xdc   : > { %s936_s22 = scalar_lea.hbm %s1473_s3, 128 }
  0xdd   : > { %p937_p11 = scmp.ne.s32.totalorder %s1473_s3, %s936_s22  ;;  %p942_p0 = scmp.lt.u32.totalorder %s936_s22, %s1473_s3 }
  0xdf   : > { %p938_p13 = pnand %p937_p11, %p1386_p3 }
  0xe1   : > { %p939_p7 = pneg %p938_p13 }
  0xe3   : > { %p944_p8 = pnand %p942_p0, %p939_p7 }
  0xe5   : > { %947 = shalt.err (!%p944_p8)
}
  0xe6   : > { %763 = dma.vmem_to_hbm [thread:$0]  (%p1386_p3), %s602_s10, 128, %s1473_s3, [#allocation12]  }
  0xe7   : > { %s1072_s12 = smov [#allocation10]   ;;  %s1073_s28 = smov [#allocation13]  }
  0xe8   : > { %s588_s23 = sshll.u32 %s1072_s12, 4  ;;  %s614_s30 = sshll.u32 %s1073_s28, 4  ;;  %s589_s23 = int_to_ptr.vmem [resolvable:$true] %s588_s23  ;;  %s615_s30 = int_to_ptr.vmem [resolvable:$true] %s614_s30 }
  0xe9   : > { %s948_s5 = scalar_lea.vmem %s589_s23, 128  ;;  %p955_p12 = scmp.lt.s32.totalorder %s589_s23, %s589_s23 }
  0xea   : > { %p949_p2 = scmp.ne.s32.totalorder %s589_s23, %s948_s5  ;;  %p956_p5 = scmp.lt.s32.totalorder %s948_s5, %s948_s5 }
  0xec   : > { %p950_p4 = pnand %p949_p2, %p1386_p3  ;;  %p957_p9 = por %p956_p5, %p955_p12 }
  0xee   : > { %p951_p1 = pneg %p950_p4 }
  0xf0   : > { %p958_p10 = pnand %p957_p9, %p951_p1 }
  0xf2   : > { %961 = shalt.err (!%p958_p10)
}
  0xf3   : > { %s962_s25 = scalar_lea.hbm %s1472_s2, 128 }
  0xf4   : > { %p963_p6 = scmp.ne.s32.totalorder %s1472_s2, %s962_s25  ;;  %p968_p7 = scmp.lt.u32.totalorder %s962_s25, %s1472_s2 }
  0xf6   : > { %p964_p11 = pnand %p963_p6, %p1386_p3 }
  0xf8   : > { %p965_p13 = pneg %p964_p11 }
  0xfa   : > { %p970_p0 = pnand %p968_p7, %p965_p13 }
  0xfc   : > { %973 = shalt.err (!%p970_p0)
}
  0xfd   : > { %761 = dma.vmem_to_hbm [thread:$0]  (%p1386_p3), %s589_s23, 128, %s1472_s2, [#allocation7]  }
  0xfe   : > { %s974_s27 = scalar_lea.vmem %s615_s30, 128  ;;  %p981_p1 = scmp.lt.s32.totalorder %s615_s30, %s615_s30 }
  0xff   : > { %p975_p8 = scmp.ne.s32.totalorder %s615_s30, %s974_s27  ;;  %p982_p12 = scmp.lt.s32.totalorder %s974_s27, %s974_s27 }
 0x101   : > { %p976_p2 = pnand %p975_p8, %p1386_p3  ;;  %p983_p5 = por %p982_p12, %p981_p1 }
 0x103   : > { %p977_p4 = pneg %p976_p2 }
 0x105   : > { %p984_p9 = pnand %p983_p5, %p977_p4 }
 0x107   : > { %987 = shalt.err (!%p984_p9)
}
 0x108   : > { %s988_s24 = scalar_lea.hbm %s1474_s4, 128 }
 0x109   : > { %p989_p10 = scmp.ne.s32.totalorder %s1474_s4, %s988_s24  ;;  %p994_p13 = scmp.lt.u32.totalorder %s988_s24, %s1474_s4 }
 0x10b   : > { %p990_p6 = pnand %p989_p10, %p1386_p3 }
 0x10d   : > { %p991_p11 = pneg %p990_p6 }
 0x10f   : > { %p996_p7 = pnand %p994_p13, %p991_p11 }
 0x111   : > { %999 = shalt.err (!%p996_p7)
}
 0x112   : > { %765 = dma.vmem_to_hbm [thread:$0]  (%p1386_p3), %s615_s30, 128, %s1474_s4, [#allocation12]  }
 0x113   : > { %1033 = dma.done.wait (%p1386_p3), [#allocation7], 128  }
 0x114   : > { %1035 = vsyncadd (%p1386_p3), [#allocation7], 4294967168 }
 0x115   : > { %1037 = dma.done.wait (%p1386_p3), [#allocation12], 256  }
 0x116   : > { %1039 = vsyncadd (%p1386_p3), [#allocation12], 4294967040 }
 0x117 PF: > { %s23_s20 = sadd.s32 1, %s1062_s20   ;;  %s1478_s15 = smov %s1046_s16 }
 0x118   : > { %p20_p0 = scmp.ge.s32.totalorder %s23_s20, 7   ;;  %s1479_s16 = smov %s1050_s17 }
 0x119   : > { %s1480_s17 = smov %s1154_s29  ;;  %s1481_s18 = smov %s1058_s19 }
 0x11a   : > { %s1482_s19 = smov %s1484_s21  ;;  %22 = sbr.rel (!%p20_p0) target bundleno = 8 (0x8), region = 113 }
 0x121   :  { %635 = vsyncpa [#allocation6], 1 }
 0x122   :  { %637 = vsyncpa [#allocation6 + $0x1], 1 }
 0x123   :  { %638 = vsyncpa [#allocation9], 1 }
 0x124   :  { %640 = vsyncpa [#allocation9 + $0x1], 1 }
 0x125   :  { %641 = vsyncpa [#allocation7], 1 }
 0x126   :  { %643 = vsyncpa [#allocation7 + $0x1], 1 }
 0x127   :  { %644 = vsyncpa [#allocation12], 1 }

</bundles_post_ra>
